<compile_context>
chip_gen: v5e
topology: v5e:2x2
jax: 0.10.0
libtpu: 0.0.40
codegen_flags: <defaults>
</compile_context>

<pallas_src>
import functools
import math

import numpy as np
import jax
import jax.numpy as jnp
from jax import lax
from jax.experimental import pallas as pl
from jax.experimental.pallas import tpu as pltpu

# ---------------- model hyper-parameters (small, deterministic) -------------
BATCH = 2
INTERNAL_NODE_HOLDER = 4
INTERNAL_NODE_LENGTH = 6
LEAF_NODE_HOLDER = 3
NEXT_HOLDER = 1
GRAPH_SIZE = INTERNAL_NODE_HOLDER + LEAF_NODE_HOLDER + NEXT_HOLDER   # 8 (== action_space)
TOT = BATCH * GRAPH_SIZE                                             # 16
EMBED_DIM = 32
HIDDEN_SIZE = 32
ATOMS = 16
N_ENCODE_LAYERS = 2
N_HEADS = 1
FF_HIDDEN = 64
LEAKY_SLOPE = 0.01          # torch nn.LeakyReLU default
NODE_FEAT = 9

assert GRAPH_SIZE & (GRAPH_SIZE - 1) == 0, "mask tricks assume power-of-two graph size"
_GS_SHIFT = GRAPH_SIZE.bit_length() - 1


# ========================= weight-slab layout (static) ======================

def _build_weight_defs():
    defs = []
    add = lambda n, r, c: defs.append((n, r, c))
    add("ii_w1", INTERNAL_NODE_LENGTH, 32); add("ii_b1", 1, 32)
    add("ii_w2", 32, EMBED_DIM);            add("ii_b2", 1, EMBED_DIM)
    add("il_w1", 8, 32);                    add("il_b1", 1, 32)
    add("il_w2", 32, EMBED_DIM);            add("il_b2", 1, EMBED_DIM)
    add("in_w1", 6, 32);                    add("in_b1", 1, 32)
    add("in_w2", 32, EMBED_DIM);            add("in_b2", 1, EMBED_DIM)
    for l in range(N_ENCODE_LAYERS):
        add(f"wq{l}", EMBED_DIM, EMBED_DIM); add(f"wk{l}", EMBED_DIM, EMBED_DIM)
        add(f"wv{l}", EMBED_DIM, EMBED_DIM); add(f"wo{l}", EMBED_DIM, EMBED_DIM)
        add(f"fw1{l}", EMBED_DIM, FF_HIDDEN); add(f"fb1{l}", 1, FF_HIDDEN)
        add(f"fw2{l}", FF_HIDDEN, EMBED_DIM); add(f"fb2{l}", 1, EMBED_DIM)
    add("p_w1", EMBED_DIM, EMBED_DIM); add("p_b1", 1, EMBED_DIM)
    add("p_w2", EMBED_DIM, EMBED_DIM); add("p_b2", 1, EMBED_DIM)
    add("v_w1", EMBED_DIM, HIDDEN_SIZE); add("v_b1", 1, HIDDEN_SIZE)
    add("v_w2", HIDDEN_SIZE, ATOMS);     add("v_b2", 1, ATOMS)
    add("a_w1", EMBED_DIM, HIDDEN_SIZE); add("a_b1", 1, HIDDEN_SIZE)
    add("a_w2", HIDDEN_SIZE, ATOMS);     add("a_b2", 1, ATOMS)
    return defs


WEIGHT_DEFS = _build_weight_defs()
SLAB_COLS = max(c for _, _, c in WEIGHT_DEFS)          # 64
_OFF, _SHAPE = {}, {}
_row = 0
for _n, _r, _c in WEIGHT_DEFS:
    _OFF[_n] = _row
    _SHAPE[_n] = (_r, _c)
    _row += ((_r + 7) // 8) * 8                        # every tensor starts on an 8-row tile
SLAB_ROWS = _row                                       # 888


def pack_params(p):
    """Pack the named parameter dict into one f32 (SLAB_ROWS, SLAB_COLS) slab."""
    slab = np.zeros((SLAB_ROWS, SLAB_COLS), np.float32)
    for name, rr, cc in WEIGHT_DEFS:
        a = np.asarray(jax.device_get(p[name]), np.float32)
        assert a.shape == (rr, cc), (name, a.shape)
        slab[_OFF[name]:_OFF[name] + rr, 0:cc] = a
    return jnp.asarray(slab)


# =========================== in-kernel helper math ===========================

def _layernorm(x, eps=1e-5):
    mu = jnp.mean(x, axis=-1, keepdims=True)
    var = jnp.mean((x - mu) ** 2, axis=-1, keepdims=True)
    return (x - mu) * lax.rsqrt(var + eps)


# ============================== fused Pallas kernel ==========================

def fused_forward_kernel(slab_ref, obs_ref, vcol_ref, vlane_ref, o_ref, *,
                         normFactor, log):
    f32 = jnp.float32
    bf16 = jnp.bfloat16

    # --- lazy weight access: slice the slab at the use site (static offsets) ----
    def W(name):
        r0 = _OFF[name]
        rr, cc = _SHAPE[name]
        return slab_ref[r0:r0 + rr, 0:cc]

    def bdot(a, b):
        # bf16 MXU operands, f32 accumulation
        return jnp.dot(a.astype(bf16), b.astype(bf16), preferred_element_type=f32)

    def mlp2(x, pre, slope):
        h = bdot(x, W(pre + "_w1")) + W(pre + "_b1")
        h = jnp.where(h >= 0.0, h, slope * h)
        return bdot(h, W(pre + "_w2")) + W(pre + "_b2")

    obs = obs_ref[...]                          # (16, 9)
    valid_col = vcol_ref[...]                   # (16, 1)  1 = valid node
    valid_lane = vlane_ref[...]                 # (1, 16)  1 = valid node

    # ---------------- init-embed MLPs, fully batched over all 16 rows ----------
    x6 = obs[:, 0:6] * normFactor               # (16, 6)
    x8 = obs[:, 0:8] * normFactor               # (16, 8)
    hi = mlp2(x6, "ii", LEAKY_SLOPE)            # internal-node embedding for all rows
    hl = mlp2(x8, "il", LEAKY_SLOPE)            # leaf-node embedding for all rows
    hn = mlp2(x6, "in", LEAKY_SLOPE)            # next-item embedding for all rows
    local = lax.broadcasted_iota(jnp.int32, (TOT, 1), 0) & (GRAPH_SIZE - 1)
    h = jnp.where(local < INTERNAL_NODE_HOLDER, hi,
                  jnp.where(local < INTERNAL_NODE_HOLDER + LEAF_NODE_HOLDER, hl, hn))

    # ---------------- block-diagonal attention mask (computed once) ------------
    ri = lax.broadcasted_iota(jnp.int32, (TOT, TOT), 0)
    ci = lax.broadcasted_iota(jnp.int32, (TOT, TOT), 1)
    same_b = (ri >> _GS_SHIFT) == (ci >> _GS_SHIFT)
    key_ok = jnp.broadcast_to(valid_lane, (TOT, TOT)) >= 0.5
    attn_bias = jnp.where(same_b & key_ok, 0.0, -1e9).astype(f32)

    # ---------------- GraphAttentionEncoder layers ------------------------------
    scale = 1.0 / math.sqrt(EMBED_DIM // N_HEADS)
    for l in range(N_ENCODE_LAYERS):
        q = bdot(h, W(f"wq{l}"))
        k = bdot(h, W(f"wk{l}"))
        v = bdot(h, W(f"wv{l}"))
        s = lax.dot_general(q.astype(bf16), k.astype(bf16),
                            dimension_numbers=(((1,), (1,)), ((), ())),
                            preferred_element_type=f32) * scale + attn_bias
        s = s - jnp.max(s, axis=-1, keepdims=True)
        p = jnp.exp(s)
        attn = p * pl.reciprocal(jnp.sum(p, axis=-1, keepdims=True), approx=True)
        att = bdot(bdot(attn, v), W(f"wo{l}"))
        h1 = _layernorm(h + att)                                   # skip + norm
        ffh = jnp.maximum(bdot(h1, W(f"fw1{l}")) + W(f"fb1{l}"), 0.0)
        ff = bdot(ffh, W(f"fw2{l}")) + W(f"fb2{l}")
        h = _layernorm(h1 + ff)                                    # skip + norm

    # ---------------- project layer + mask -------------------------------------
    proj = mlp2(h, "p", LEAKY_SLOPE)            # (16, E)
    trans = proj * valid_col                    # zero invalid rows (in-place view in torch)

    # ---------------- masked graph pooling (both batches in one matmul) --------
    rb = lax.broadcasted_iota(jnp.int32, (BATCH, TOT), 0)
    cb = lax.broadcasted_iota(jnp.int32, (BATCH, TOT), 1) >> _GS_SHIFT
    blk = (rb == cb).astype(f32)                                    # (2,16) block indicator
    pooled = bdot(blk, trans)                                       # (2, E) masked sums
    cnt = jnp.sum(blk * jnp.broadcast_to(valid_lane, (BATCH, TOT)),
                  axis=-1, keepdims=True)                           # (2, 1) valid counts
    ge = pooled * pl.reciprocal(cnt + 1e-4, approx=True)            # masked mean

    # ---------------- dueling heads (NoisyLinear, eval / mu-only) --------------
    vh = mlp2(ge, "v", 0.0)                                         # (2, ATOMS)
    ah = mlp2(trans, "a", 0.0)                                      # (16, ATOMS)
    ah3 = ah.reshape(BATCH, GRAPH_SIZE, ATOMS)                      # (2, 8, ATOMS)
    a_mean = jnp.sum(ah3, axis=1, keepdims=True) * (1.0 / GRAPH_SIZE)
    qd = vh.reshape(BATCH, 1, ATOMS) + ah3 - a_mean                 # dueling combine
    qd = qd - jnp.max(qd, axis=-1, keepdims=True)
    if log:
        qd = qd - jnp.log(jnp.sum(jnp.exp(qd), axis=-1, keepdims=True))
    else:
        e = jnp.exp(qd)
        qd = e * pl.reciprocal(jnp.sum(e, axis=-1, keepdims=True), approx=True)

    # _forward_local returns only the leaf-node slice; single consolidated store.
    o_ref[...] = qd[:, INTERNAL_NODE_HOLDER:INTERNAL_NODE_HOLDER + LEAF_NODE_HOLDER, :]


# ============================ parameters (synthetic) =========================

def init_params(key):
    ks = iter(jax.random.split(key, 64))
    nk = lambda: next(ks)

    def dense(din, dout):
        w = jax.random.normal(nk(), (din, dout), jnp.float32) / math.sqrt(din)
        b = jnp.zeros((1, dout), jnp.float32)
        return w, b

    def mat(din, dout):
        return jax.random.normal(nk(), (din, dout), jnp.float32) / math.sqrt(din)

    p = {}
    p["ii_w1"], p["ii_b1"] = dense(INTERNAL_NODE_LENGTH, 32)
    p["ii_w2"], p["ii_b2"] = dense(32, EMBED_DIM)
    p["il_w1"], p["il_b1"] = dense(8, 32)
    p["il_w2"], p["il_b2"] = dense(32, EMBED_DIM)
    p["in_w1"], p["in_b1"] = dense(6, 32)
    p["in_w2"], p["in_b2"] = dense(32, EMBED_DIM)
    for l in range(N_ENCODE_LAYERS):
        p[f"wq{l}"] = mat(EMBED_DIM, EMBED_DIM)
        p[f"wk{l}"] = mat(EMBED_DIM, EMBED_DIM)
        p[f"wv{l}"] = mat(EMBED_DIM, EMBED_DIM)
        p[f"wo{l}"] = mat(EMBED_DIM, EMBED_DIM)
        p[f"fw1{l}"], p[f"fb1{l}"] = dense(EMBED_DIM, FF_HIDDEN)
        p[f"fw2{l}"], p[f"fb2{l}"] = dense(FF_HIDDEN, EMBED_DIM)
    p["p_w1"], p["p_b1"] = dense(EMBED_DIM, EMBED_DIM)
    p["p_w2"], p["p_b2"] = dense(EMBED_DIM, EMBED_DIM)
    p["v_w1"], p["v_b1"] = dense(EMBED_DIM, HIDDEN_SIZE)
    p["v_w2"], p["v_b2"] = dense(HIDDEN_SIZE, ATOMS)
    p["a_w1"], p["a_b1"] = dense(EMBED_DIM, HIDDEN_SIZE)
    p["a_w2"], p["a_b2"] = dense(HIDDEN_SIZE, ATOMS)
    return p


# ================================ forward ====================================

@functools.partial(jax.jit, static_argnames=("normFactor", "log"))
def attention_model_forward(obs, slab, normFactor=1.0, log=False):
    B, N, F = obs.shape
    obs2d = obs.reshape(B * N, F)                    # trivial wrapper-side reshape
    valid_col = obs2d[:, F - 1:F]                    # (B*N, 1) row-oriented validity
    valid_lane = obs[:, :, F - 1].reshape(1, B * N)  # (1, B*N) lane-oriented validity

    vmem = pl.BlockSpec(memory_space=pltpu.MemorySpace.VMEM)
    out = pl.pallas_call(
        functools.partial(fused_forward_kernel,
                          normFactor=float(normFactor), log=bool(log)),
        out_shape=jax.ShapeDtypeStruct((B, LEAF_NODE_HOLDER, ATOMS), jnp.float32),
        in_specs=[vmem, vmem, vmem, vmem],
        out_specs=vmem,
    )(slab, obs2d, valid_col, valid_lane)
    return out


# =================================== main ====================================

if __name__ == "__main__":
    key = jax.random.PRNGKey(0)
    k_obs, k_params = jax.random.split(key)
    params = init_params(k_params)
    slab = pack_params(params)                      # one-time host-side packing

    feats = jax.random.uniform(k_obs, (BATCH, GRAPH_SIZE, NODE_FEAT), jnp.float32)
    valid_flags = jnp.array([[1, 1, 1, 1, 1, 1, 1, 1],
                             [1, 1, 0, 1, 1, 0, 1, 1]], dtype=jnp.float32)
    obs = feats.at[:, :, -1].set(valid_flags)

    q = attention_model_forward(obs, slab, normFactor=1.0, log=False)
    q = jax.block_until_ready(q)

    assert q.shape == (BATCH, LEAF_NODE_HOLDER, ATOMS), q.shape
    assert bool(jnp.all(jnp.isfinite(q)))
    print("KERNEL_OK")
</pallas_src>

<mosaic_0001>
module attributes {stable_mosaic.version = 11 : i64} {
  func.func @fused_forward_kernel(%arg0: memref<888x64xf32, #tpu.memory_space<vmem>>, %arg1: memref<16x9xf32, #tpu.memory_space<vmem>>, %arg2: memref<16x1xf32, #tpu.memory_space<vmem>>, %arg3: memref<1x16xf32, #tpu.memory_space<vmem>>, %arg4: memref<2x3x16xf32, #tpu.memory_space<vmem>>) attributes {dimension_semantics = [], scalar_prefetch = 0 : i64, scratch_operands = 0 : i64, tpu.core_type = #tpu.core_type<tc>} {
    %c0 = arith.constant 0 : index
    %c0_0 = arith.constant 0 : index
    %0 = vector.load %arg1[%c0, %c0_0] : memref<16x9xf32, #tpu.memory_space<vmem>>, vector<16x9xf32>
    %c0_1 = arith.constant 0 : index
    %c0_2 = arith.constant 0 : index
    %1 = vector.load %arg2[%c0_1, %c0_2] : memref<16x1xf32, #tpu.memory_space<vmem>>, vector<16x1xf32>
    %c0_3 = arith.constant 0 : index
    %c0_4 = arith.constant 0 : index
    %2 = vector.load %arg3[%c0_3, %c0_4] : memref<1x16xf32, #tpu.memory_space<vmem>>, vector<1x16xf32>
    %3 = vector.extract_strided_slice %0 {offsets = [0, 0], sizes = [16, 6], strides = [1, 1]} : vector<16x9xf32> to vector<16x6xf32>
    %cst = arith.constant 1.000000e+00 : f32
    %4 = vector.broadcast %cst : f32 to vector<16x6xf32>
    %5 = arith.mulf %3, %4 : vector<16x6xf32>
    %6 = vector.extract_strided_slice %0 {offsets = [0, 0], sizes = [16, 8], strides = [1, 1]} : vector<16x9xf32> to vector<16x8xf32>
    %cst_5 = arith.constant 1.000000e+00 : f32
    %7 = vector.broadcast %cst_5 : f32 to vector<16x8xf32>
    %8 = arith.mulf %6, %7 : vector<16x8xf32>
    %c0_6 = arith.constant 0 : index
    %c0_7 = arith.constant 0 : index
    %9 = vector.load %arg0[%c0_6, %c0_7] : memref<888x64xf32, #tpu.memory_space<vmem>>, vector<6x32xf32>
    %10 = arith.truncf %5 : vector<16x6xf32> to vector<16x6xbf16>
    %11 = arith.truncf %9 : vector<6x32xf32> to vector<6x32xbf16>
    %cst_8 = arith.constant dense<0.000000e+00> : vector<16x32xf32>
    %12 = tpu.matmul %10, %11, %cst_8 {dimension_numbers = #tpu.dot_dimension_numbers<[1], [0], [0], [1], [0, 0, 1, 1], [], []>} : vector<16x6xbf16>, vector<6x32xbf16>, vector<16x32xf32> -> vector<16x32xf32>
    %c8 = arith.constant 8 : index
    %c0_9 = arith.constant 0 : index
    %13 = vector.load %arg0[%c8, %c0_9] : memref<888x64xf32, #tpu.memory_space<vmem>>, vector<1x32xf32>
    %14 = vector.broadcast %13 : vector<1x32xf32> to vector<16x32xf32>
    %15 = arith.addf %12, %14 : vector<16x32xf32>
    %cst_10 = arith.constant 0.000000e+00 : f32
    %16 = vector.broadcast %cst_10 : f32 to vector<16x32xf32>
    %17 = arith.cmpf oge, %15, %16 : vector<16x32xf32>
    %cst_11 = arith.constant 0.00999999977 : f32
    %18 = vector.broadcast %cst_11 : f32 to vector<16x32xf32>
    %19 = arith.mulf %18, %15 : vector<16x32xf32>
    %20 = arith.select %17, %15, %19 : vector<16x32xi1>, vector<16x32xf32>
    %c16 = arith.constant 16 : index
    %c0_12 = arith.constant 0 : index
    %21 = vector.load %arg0[%c16, %c0_12] : memref<888x64xf32, #tpu.memory_space<vmem>>, vector<32x32xf32>
    %22 = arith.truncf %20 : vector<16x32xf32> to vector<16x32xbf16>
    %23 = arith.truncf %21 : vector<32x32xf32> to vector<32x32xbf16>
    %cst_13 = arith.constant dense<0.000000e+00> : vector<16x32xf32>
    %24 = tpu.matmul %22, %23, %cst_13 {dimension_numbers = #tpu.dot_dimension_numbers<[1], [0], [0], [1], [0, 0, 1, 1], [], []>} : vector<16x32xbf16>, vector<32x32xbf16>, vector<16x32xf32> -> vector<16x32xf32>
    %c48 = arith.constant 48 : index
    %c0_14 = arith.constant 0 : index
    %25 = vector.load %arg0[%c48, %c0_14] : memref<888x64xf32, #tpu.memory_space<vmem>>, vector<1x32xf32>
    %26 = vector.broadcast %25 : vector<1x32xf32> to vector<16x32xf32>
    %27 = arith.addf %24, %26 : vector<16x32xf32>
    %c56 = arith.constant 56 : index
    %c0_15 = arith.constant 0 : index
    %28 = vector.load %arg0[%c56, %c0_15] : memref<888x64xf32, #tpu.memory_space<vmem>>, vector<8x32xf32>
    %29 = arith.truncf %8 : vector<16x8xf32> to vector<16x8xbf16>
    %30 = arith.truncf %28 : vector<8x32xf32> to vector<8x32xbf16>
    %cst_16 = arith.constant dense<0.000000e+00> : vector<16x32xf32>
    %31 = tpu.matmul %29, %30, %cst_16 {dimension_numbers = #tpu.dot_dimension_numbers<[1], [0], [0], [1], [0, 0, 1, 1], [], []>} : vector<16x8xbf16>, vector<8x32xbf16>, vector<16x32xf32> -> vector<16x32xf32>
    %c64 = arith.constant 64 : index
    %c0_17 = arith.constant 0 : index
    %32 = vector.load %arg0[%c64, %c0_17] : memref<888x64xf32, #tpu.memory_space<vmem>>, vector<1x32xf32>
    %33 = vector.broadcast %32 : vector<1x32xf32> to vector<16x32xf32>
    %34 = arith.addf %31, %33 : vector<16x32xf32>
    %cst_18 = arith.constant 0.000000e+00 : f32
    %35 = vector.broadcast %cst_18 : f32 to vector<16x32xf32>
    %36 = arith.cmpf oge, %34, %35 : vector<16x32xf32>
    %cst_19 = arith.constant 0.00999999977 : f32
    %37 = vector.broadcast %cst_19 : f32 to vector<16x32xf32>
    %38 = arith.mulf %37, %34 : vector<16x32xf32>
    %39 = arith.select %36, %34, %38 : vector<16x32xi1>, vector<16x32xf32>
    %c72 = arith.constant 72 : index
    %c0_20 = arith.constant 0 : index
    %40 = vector.load %arg0[%c72, %c0_20] : memref<888x64xf32, #tpu.memory_space<vmem>>, vector<32x32xf32>
    %41 = arith.truncf %39 : vector<16x32xf32> to vector<16x32xbf16>
    %42 = arith.truncf %40 : vector<32x32xf32> to vector<32x32xbf16>
    %cst_21 = arith.constant dense<0.000000e+00> : vector<16x32xf32>
    %43 = tpu.matmul %41, %42, %cst_21 {dimension_numbers = #tpu.dot_dimension_numbers<[1], [0], [0], [1], [0, 0, 1, 1], [], []>} : vector<16x32xbf16>, vector<32x32xbf16>, vector<16x32xf32> -> vector<16x32xf32>
    %c104 = arith.constant 104 : index
    %c0_22 = arith.constant 0 : index
    %44 = vector.load %arg0[%c104, %c0_22] : memref<888x64xf32, #tpu.memory_space<vmem>>, vector<1x32xf32>
    %45 = vector.broadcast %44 : vector<1x32xf32> to vector<16x32xf32>
    %46 = arith.addf %43, %45 : vector<16x32xf32>
    %c112 = arith.constant 112 : index
    %c0_23 = arith.constant 0 : index
    %47 = vector.load %arg0[%c112, %c0_23] : memref<888x64xf32, #tpu.memory_space<vmem>>, vector<6x32xf32>
    %48 = arith.truncf %5 : vector<16x6xf32> to vector<16x6xbf16>
    %49 = arith.truncf %47 : vector<6x32xf32> to vector<6x32xbf16>
    %cst_24 = arith.constant dense<0.000000e+00> : vector<16x32xf32>
    %50 = tpu.matmul %48, %49, %cst_24 {dimension_numbers = #tpu.dot_dimension_numbers<[1], [0], [0], [1], [0, 0, 1, 1], [], []>} : vector<16x6xbf16>, vector<6x32xbf16>, vector<16x32xf32> -> vector<16x32xf32>
    %c120 = arith.constant 120 : index
    %c0_25 = arith.constant 0 : index
    %51 = vector.load %arg0[%c120, %c0_25] : memref<888x64xf32, #tpu.memory_space<vmem>>, vector<1x32xf32>
    %52 = vector.broadcast %51 : vector<1x32xf32> to vector<16x32xf32>
    %53 = arith.addf %50, %52 : vector<16x32xf32>
    %cst_26 = arith.constant 0.000000e+00 : f32
    %54 = vector.broadcast %cst_26 : f32 to vector<16x32xf32>
    %55 = arith.cmpf oge, %53, %54 : vector<16x32xf32>
    %cst_27 = arith.constant 0.00999999977 : f32
    %56 = vector.broadcast %cst_27 : f32 to vector<16x32xf32>
    %57 = arith.mulf %56, %53 : vector<16x32xf32>
    %58 = arith.select %55, %53, %57 : vector<16x32xi1>, vector<16x32xf32>
    %c128 = arith.constant 128 : index
    %c0_28 = arith.constant 0 : index
    %59 = vector.load %arg0[%c128, %c0_28] : memref<888x64xf32, #tpu.memory_space<vmem>>, vector<32x32xf32>
    %60 = arith.truncf %58 : vector<16x32xf32> to vector<16x32xbf16>
    %61 = arith.truncf %59 : vector<32x32xf32> to vector<32x32xbf16>
    %cst_29 = arith.constant dense<0.000000e+00> : vector<16x32xf32>
    %62 = tpu.matmul %60, %61, %cst_29 {dimension_numbers = #tpu.dot_dimension_numbers<[1], [0], [0], [1], [0, 0, 1, 1], [], []>} : vector<16x32xbf16>, vector<32x32xbf16>, vector<16x32xf32> -> vector<16x32xf32>
    %c160 = arith.constant 160 : index
    %c0_30 = arith.constant 0 : index
    %63 = vector.load %arg0[%c160, %c0_30] : memref<888x64xf32, #tpu.memory_space<vmem>>, vector<1x32xf32>
    %64 = vector.broadcast %63 : vector<1x32xf32> to vector<16x32xf32>
    %65 = arith.addf %62, %64 : vector<16x32xf32>
    %66 = tpu.iota {dimensions = array<i32: 0>} : vector<16x1xi32>
    %c7_i32 = arith.constant 7 : i32
    %67 = vector.broadcast %c7_i32 : i32 to vector<16x1xi32>
    %68 = arith.andi %66, %67 : vector<16x1xi32>
    %c4_i32 = arith.constant 4 : i32
    %69 = vector.broadcast %c4_i32 : i32 to vector<16x1xi32>
    %70 = arith.cmpi slt, %68, %69 : vector<16x1xi32>
    %c7_i32_31 = arith.constant 7 : i32
    %71 = vector.broadcast %c7_i32_31 : i32 to vector<16x1xi32>
    %72 = arith.cmpi slt, %68, %71 : vector<16x1xi32>
    %73 = vector.shape_cast %72 : vector<16x1xi1> to vector<16x1xi1>
    %74 = vector.broadcast %73 : vector<16x1xi1> to vector<16x32xi1>
    %75 = arith.select %74, %46, %65 : vector<16x32xi1>, vector<16x32xf32>
    %76 = vector.shape_cast %70 : vector<16x1xi1> to vector<16x1xi1>
    %77 = vector.broadcast %76 : vector<16x1xi1> to vector<16x32xi1>
    %78 = arith.select %77, %27, %75 : vector<16x32xi1>, vector<16x32xf32>
    %79 = tpu.iota {dimensions = array<i32: 0>} : vector<16x16xi32>
    %80 = tpu.iota {dimensions = array<i32: 1>} : vector<16x16xi32>
    %c3_i32 = arith.constant 3 : i32
    %81 = vector.broadcast %c3_i32 : i32 to vector<16x16xi32>
    %82 = arith.shrsi %79, %81 : vector<16x16xi32>
    %c3_i32_32 = arith.constant 3 : i32
    %83 = vector.broadcast %c3_i32_32 : i32 to vector<16x16xi32>
    %84 = arith.shrsi %80, %83 : vector<16x16xi32>
    %85 = arith.cmpi eq, %82, %84 : vector<16x16xi32>
    %86 = vector.shape_cast %2 : vector<1x16xf32> to vector<1x16xf32>
    %87 = vector.broadcast %86 : vector<1x16xf32> to vector<16x16xf32>
    %cst_33 = arith.constant 5.000000e-01 : f32
    %88 = vector.broadcast %cst_33 : f32 to vector<16x16xf32>
    %89 = arith.cmpf oge, %87, %88 : vector<16x16xf32>
    %90 = arith.andi %85, %89 : vector<16x16xi1>
    %cst_34 = arith.constant 0.000000e+00 : f32
    %cst_35 = arith.constant -1.000000e+09 : f32
    %91 = vector.broadcast %cst_34 : f32 to vector<16x16xf32>
    %92 = vector.broadcast %cst_35 : f32 to vector<16x16xf32>
    %93 = arith.select %90, %91, %92 : vector<16x16xi1>, vector<16x16xf32>
    %c168 = arith.constant 168 : index
    %c0_36 = arith.constant 0 : index
    %94 = vector.load %arg0[%c168, %c0_36] : memref<888x64xf32, #tpu.memory_space<vmem>>, vector<32x32xf32>
    %95 = arith.truncf %78 : vector<16x32xf32> to vector<16x32xbf16>
    %96 = arith.truncf %94 : vector<32x32xf32> to vector<32x32xbf16>
    %cst_37 = arith.constant dense<0.000000e+00> : vector<16x32xf32>
    %97 = tpu.matmul %95, %96, %cst_37 {dimension_numbers = #tpu.dot_dimension_numbers<[1], [0], [0], [1], [0, 0, 1, 1], [], []>} : vector<16x32xbf16>, vector<32x32xbf16>, vector<16x32xf32> -> vector<16x32xf32>
    %c200 = arith.constant 200 : index
    %c0_38 = arith.constant 0 : index
    %98 = vector.load %arg0[%c200, %c0_38] : memref<888x64xf32, #tpu.memory_space<vmem>>, vector<32x32xf32>
    %99 = arith.truncf %78 : vector<16x32xf32> to vector<16x32xbf16>
    %100 = arith.truncf %98 : vector<32x32xf32> to vector<32x32xbf16>
    %cst_39 = arith.constant dense<0.000000e+00> : vector<16x32xf32>
    %101 = tpu.matmul %99, %100, %cst_39 {dimension_numbers = #tpu.dot_dimension_numbers<[1], [0], [0], [1], [0, 0, 1, 1], [], []>} : vector<16x32xbf16>, vector<32x32xbf16>, vector<16x32xf32> -> vector<16x32xf32>
    %c232 = arith.constant 232 : index
    %c0_40 = arith.constant 0 : index
    %102 = vector.load %arg0[%c232, %c0_40] : memref<888x64xf32, #tpu.memory_space<vmem>>, vector<32x32xf32>
    %103 = arith.truncf %78 : vector<16x32xf32> to vector<16x32xbf16>
    %104 = arith.truncf %102 : vector<32x32xf32> to vector<32x32xbf16>
    %cst_41 = arith.constant dense<0.000000e+00> : vector<16x32xf32>
    %105 = tpu.matmul %103, %104, %cst_41 {dimension_numbers = #tpu.dot_dimension_numbers<[1], [0], [0], [1], [0, 0, 1, 1], [], []>} : vector<16x32xbf16>, vector<32x32xbf16>, vector<16x32xf32> -> vector<16x32xf32>
    %106 = arith.truncf %97 : vector<16x32xf32> to vector<16x32xbf16>
    %107 = arith.truncf %101 : vector<16x32xf32> to vector<16x32xbf16>
    %cst_42 = arith.constant dense<0.000000e+00> : vector<16x16xf32>
    %108 = tpu.matmul %106, %107, %cst_42 {dimension_numbers = #tpu.dot_dimension_numbers<[1], [1], [0], [0], [0, 0, 1, 0], [], []>} : vector<16x32xbf16>, vector<16x32xbf16>, vector<16x16xf32> -> vector<16x16xf32>
    %cst_43 = arith.constant 0.176776692 : f32
    %109 = vector.broadcast %cst_43 : f32 to vector<16x16xf32>
    %110 = arith.mulf %108, %109 : vector<16x16xf32>
    %111 = arith.addf %110, %93 : vector<16x16xf32>
    %cst_44 = arith.constant dense<0xFF800000> : vector<16xf32>
    %112 = vector.multi_reduction <maximumf>, %111, %cst_44 [1] : vector<16x16xf32> to vector<16xf32>
    %113 = vector.shape_cast %112 : vector<16xf32> to vector<16x1xf32>
    %114 = vector.broadcast %113 : vector<16x1xf32> to vector<16x16xf32>
    %115 = arith.subf %111, %114 : vector<16x16xf32>
    %116 = math.exp %115 : vector<16x16xf32>
    %cst_45 = arith.constant dense<0.000000e+00> : vector<16xf32>
    %117 = vector.multi_reduction <add>, %116, %cst_45 [1] : vector<16x16xf32> to vector<16xf32>
    %118 = vector.shape_cast %117 : vector<16xf32> to vector<16x1xf32>
    %119 = tpu.reciprocal %118 {approx = true} : vector<16x1xf32> -> vector<16x1xf32>
    %120 = vector.broadcast %119 : vector<16x1xf32> to vector<16x16xf32>
    %121 = arith.mulf %116, %120 : vector<16x16xf32>
    %122 = arith.truncf %121 : vector<16x16xf32> to vector<16x16xbf16>
    %123 = arith.truncf %105 : vector<16x32xf32> to vector<16x32xbf16>
    %cst_46 = arith.constant dense<0.000000e+00> : vector<16x32xf32>
    %124 = tpu.matmul %122, %123, %cst_46 {dimension_numbers = #tpu.dot_dimension_numbers<[1], [0], [0], [1], [0, 0, 1, 1], [], []>} : vector<16x16xbf16>, vector<16x32xbf16>, vector<16x32xf32> -> vector<16x32xf32>
    %c264 = arith.constant 264 : index
    %c0_47 = arith.constant 0 : index
    %125 = vector.load %arg0[%c264, %c0_47] : memref<888x64xf32, #tpu.memory_space<vmem>>, vector<32x32xf32>
    %126 = arith.truncf %124 : vector<16x32xf32> to vector<16x32xbf16>
    %127 = arith.truncf %125 : vector<32x32xf32> to vector<32x32xbf16>
    %cst_48 = arith.constant dense<0.000000e+00> : vector<16x32xf32>
    %128 = tpu.matmul %126, %127, %cst_48 {dimension_numbers = #tpu.dot_dimension_numbers<[1], [0], [0], [1], [0, 0, 1, 1], [], []>} : vector<16x32xbf16>, vector<32x32xbf16>, vector<16x32xf32> -> vector<16x32xf32>
    %129 = arith.addf %78, %128 : vector<16x32xf32>
    %cst_49 = arith.constant dense<0.000000e+00> : vector<16xf32>
    %130 = vector.multi_reduction <add>, %129, %cst_49 [1] : vector<16x32xf32> to vector<16xf32>
    %131 = vector.shape_cast %130 : vector<16xf32> to vector<16x1xf32>
    %cst_50 = arith.constant 3.200000e+01 : f32
    %132 = vector.broadcast %cst_50 : f32 to vector<16x1xf32>
    %133 = arith.divf %131, %132 : vector<16x1xf32>
    %134 = vector.broadcast %133 : vector<16x1xf32> to vector<16x32xf32>
    %135 = arith.subf %129, %134 : vector<16x32xf32>
    %136 = arith.mulf %135, %135 : vector<16x32xf32>
    %cst_51 = arith.constant dense<0.000000e+00> : vector<16xf32>
    %137 = vector.multi_reduction <add>, %136, %cst_51 [1] : vector<16x32xf32> to vector<16xf32>
    %138 = vector.shape_cast %137 : vector<16xf32> to vector<16x1xf32>
    %cst_52 = arith.constant 3.200000e+01 : f32
    %139 = vector.broadcast %cst_52 : f32 to vector<16x1xf32>
    %140 = arith.divf %138, %139 : vector<16x1xf32>
    %141 = vector.broadcast %133 : vector<16x1xf32> to vector<16x32xf32>
    %142 = arith.subf %129, %141 : vector<16x32xf32>
    %cst_53 = arith.constant 9.99999974E-6 : f32
    %143 = vector.broadcast %cst_53 : f32 to vector<16x1xf32>
    %144 = arith.addf %140, %143 : vector<16x1xf32>
    %145 = math.rsqrt %144 : vector<16x1xf32>
    %146 = vector.broadcast %145 : vector<16x1xf32> to vector<16x32xf32>
    %147 = arith.mulf %142, %146 : vector<16x32xf32>
    %c296 = arith.constant 296 : index
    %c0_54 = arith.constant 0 : index
    %148 = vector.load %arg0[%c296, %c0_54] : memref<888x64xf32, #tpu.memory_space<vmem>>, vector<32x64xf32>
    %149 = arith.truncf %147 : vector<16x32xf32> to vector<16x32xbf16>
    %150 = arith.truncf %148 : vector<32x64xf32> to vector<32x64xbf16>
    %cst_55 = arith.constant dense<0.000000e+00> : vector<16x64xf32>
    %151 = tpu.matmul %149, %150, %cst_55 {dimension_numbers = #tpu.dot_dimension_numbers<[1], [0], [0], [1], [0, 0, 1, 1], [], []>} : vector<16x32xbf16>, vector<32x64xbf16>, vector<16x64xf32> -> vector<16x64xf32>
    %c328 = arith.constant 328 : index
    %c0_56 = arith.constant 0 : index
    %152 = vector.load %arg0[%c328, %c0_56] : memref<888x64xf32, #tpu.memory_space<vmem>>, vector<1x64xf32>
    %153 = vector.broadcast %152 : vector<1x64xf32> to vector<16x64xf32>
    %154 = arith.addf %151, %153 : vector<16x64xf32>
    %cst_57 = arith.constant 0.000000e+00 : f32
    %155 = vector.broadcast %cst_57 : f32 to vector<16x64xf32>
    %156 = arith.maximumf %154, %155 : vector<16x64xf32>
    %c336 = arith.constant 336 : index
    %c0_58 = arith.constant 0 : index
    %157 = vector.load %arg0[%c336, %c0_58] : memref<888x64xf32, #tpu.memory_space<vmem>>, vector<64x32xf32>
    %158 = arith.truncf %156 : vector<16x64xf32> to vector<16x64xbf16>
    %159 = arith.truncf %157 : vector<64x32xf32> to vector<64x32xbf16>
    %cst_59 = arith.constant dense<0.000000e+00> : vector<16x32xf32>
    %160 = tpu.matmul %158, %159, %cst_59 {dimension_numbers = #tpu.dot_dimension_numbers<[1], [0], [0], [1], [0, 0, 1, 1], [], []>} : vector<16x64xbf16>, vector<64x32xbf16>, vector<16x32xf32> -> vector<16x32xf32>
    %c400 = arith.constant 400 : index
    %c0_60 = arith.constant 0 : index
    %161 = vector.load %arg0[%c400, %c0_60] : memref<888x64xf32, #tpu.memory_space<vmem>>, vector<1x32xf32>
    %162 = vector.broadcast %161 : vector<1x32xf32> to vector<16x32xf32>
    %163 = arith.addf %160, %162 : vector<16x32xf32>
    %164 = arith.addf %147, %163 : vector<16x32xf32>
    %cst_61 = arith.constant dense<0.000000e+00> : vector<16xf32>
    %165 = vector.multi_reduction <add>, %164, %cst_61 [1] : vector<16x32xf32> to vector<16xf32>
    %166 = vector.shape_cast %165 : vector<16xf32> to vector<16x1xf32>
    %cst_62 = arith.constant 3.200000e+01 : f32
    %167 = vector.broadcast %cst_62 : f32 to vector<16x1xf32>
    %168 = arith.divf %166, %167 : vector<16x1xf32>
    %169 = vector.broadcast %168 : vector<16x1xf32> to vector<16x32xf32>
    %170 = arith.subf %164, %169 : vector<16x32xf32>
    %171 = arith.mulf %170, %170 : vector<16x32xf32>
    %cst_63 = arith.constant dense<0.000000e+00> : vector<16xf32>
    %172 = vector.multi_reduction <add>, %171, %cst_63 [1] : vector<16x32xf32> to vector<16xf32>
    %173 = vector.shape_cast %172 : vector<16xf32> to vector<16x1xf32>
    %cst_64 = arith.constant 3.200000e+01 : f32
    %174 = vector.broadcast %cst_64 : f32 to vector<16x1xf32>
    %175 = arith.divf %173, %174 : vector<16x1xf32>
    %176 = vector.broadcast %168 : vector<16x1xf32> to vector<16x32xf32>
    %177 = arith.subf %164, %176 : vector<16x32xf32>
    %cst_65 = arith.constant 9.99999974E-6 : f32
    %178 = vector.broadcast %cst_65 : f32 to vector<16x1xf32>
    %179 = arith.addf %175, %178 : vector<16x1xf32>
    %180 = math.rsqrt %179 : vector<16x1xf32>
    %181 = vector.broadcast %180 : vector<16x1xf32> to vector<16x32xf32>
    %182 = arith.mulf %177, %181 : vector<16x32xf32>
    %c408 = arith.constant 408 : index
    %c0_66 = arith.constant 0 : index
    %183 = vector.load %arg0[%c408, %c0_66] : memref<888x64xf32, #tpu.memory_space<vmem>>, vector<32x32xf32>
    %184 = arith.truncf %182 : vector<16x32xf32> to vector<16x32xbf16>
    %185 = arith.truncf %183 : vector<32x32xf32> to vector<32x32xbf16>
    %cst_67 = arith.constant dense<0.000000e+00> : vector<16x32xf32>
    %186 = tpu.matmul %184, %185, %cst_67 {dimension_numbers = #tpu.dot_dimension_numbers<[1], [0], [0], [1], [0, 0, 1, 1], [], []>} : vector<16x32xbf16>, vector<32x32xbf16>, vector<16x32xf32> -> vector<16x32xf32>
    %c440 = arith.constant 440 : index
    %c0_68 = arith.constant 0 : index
    %187 = vector.load %arg0[%c440, %c0_68] : memref<888x64xf32, #tpu.memory_space<vmem>>, vector<32x32xf32>
    %188 = arith.truncf %182 : vector<16x32xf32> to vector<16x32xbf16>
    %189 = arith.truncf %187 : vector<32x32xf32> to vector<32x32xbf16>
    %cst_69 = arith.constant dense<0.000000e+00> : vector<16x32xf32>
    %190 = tpu.matmul %188, %189, %cst_69 {dimension_numbers = #tpu.dot_dimension_numbers<[1], [0], [0], [1], [0, 0, 1, 1], [], []>} : vector<16x32xbf16>, vector<32x32xbf16>, vector<16x32xf32> -> vector<16x32xf32>
    %c472 = arith.constant 472 : index
    %c0_70 = arith.constant 0 : index
    %191 = vector.load %arg0[%c472, %c0_70] : memref<888x64xf32, #tpu.memory_space<vmem>>, vector<32x32xf32>
    %192 = arith.truncf %182 : vector<16x32xf32> to vector<16x32xbf16>
    %193 = arith.truncf %191 : vector<32x32xf32> to vector<32x32xbf16>
    %cst_71 = arith.constant dense<0.000000e+00> : vector<16x32xf32>
    %194 = tpu.matmul %192, %193, %cst_71 {dimension_numbers = #tpu.dot_dimension_numbers<[1], [0], [0], [1], [0, 0, 1, 1], [], []>} : vector<16x32xbf16>, vector<32x32xbf16>, vector<16x32xf32> -> vector<16x32xf32>
    %195 = arith.truncf %186 : vector<16x32xf32> to vector<16x32xbf16>
    %196 = arith.truncf %190 : vector<16x32xf32> to vector<16x32xbf16>
    %cst_72 = arith.constant dense<0.000000e+00> : vector<16x16xf32>
    %197 = tpu.matmul %195, %196, %cst_72 {dimension_numbers = #tpu.dot_dimension_numbers<[1], [1], [0], [0], [0, 0, 1, 0], [], []>} : vector<16x32xbf16>, vector<16x32xbf16>, vector<16x16xf32> -> vector<16x16xf32>
    %cst_73 = arith.constant 0.176776692 : f32
    %198 = vector.broadcast %cst_73 : f32 to vector<16x16xf32>
    %199 = arith.mulf %197, %198 : vector<16x16xf32>
    %200 = arith.addf %199, %93 : vector<16x16xf32>
    %cst_74 = arith.constant dense<0xFF800000> : vector<16xf32>
    %201 = vector.multi_reduction <maximumf>, %200, %cst_74 [1] : vector<16x16xf32> to vector<16xf32>
    %202 = vector.shape_cast %201 : vector<16xf32> to vector<16x1xf32>
    %203 = vector.broadcast %202 : vector<16x1xf32> to vector<16x16xf32>
    %204 = arith.subf %200, %203 : vector<16x16xf32>
    %205 = math.exp %204 : vector<16x16xf32>
    %cst_75 = arith.constant dense<0.000000e+00> : vector<16xf32>
    %206 = vector.multi_reduction <add>, %205, %cst_75 [1] : vector<16x16xf32> to vector<16xf32>
    %207 = vector.shape_cast %206 : vector<16xf32> to vector<16x1xf32>
    %208 = tpu.reciprocal %207 {approx = true} : vector<16x1xf32> -> vector<16x1xf32>
    %209 = vector.broadcast %208 : vector<16x1xf32> to vector<16x16xf32>
    %210 = arith.mulf %205, %209 : vector<16x16xf32>
    %211 = arith.truncf %210 : vector<16x16xf32> to vector<16x16xbf16>
    %212 = arith.truncf %194 : vector<16x32xf32> to vector<16x32xbf16>
    %cst_76 = arith.constant dense<0.000000e+00> : vector<16x32xf32>
    %213 = tpu.matmul %211, %212, %cst_76 {dimension_numbers = #tpu.dot_dimension_numbers<[1], [0], [0], [1], [0, 0, 1, 1], [], []>} : vector<16x16xbf16>, vector<16x32xbf16>, vector<16x32xf32> -> vector<16x32xf32>
    %c504 = arith.constant 504 : index
    %c0_77 = arith.constant 0 : index
    %214 = vector.load %arg0[%c504, %c0_77] : memref<888x64xf32, #tpu.memory_space<vmem>>, vector<32x32xf32>
    %215 = arith.truncf %213 : vector<16x32xf32> to vector<16x32xbf16>
    %216 = arith.truncf %214 : vector<32x32xf32> to vector<32x32xbf16>
    %cst_78 = arith.constant dense<0.000000e+00> : vector<16x32xf32>
    %217 = tpu.matmul %215, %216, %cst_78 {dimension_numbers = #tpu.dot_dimension_numbers<[1], [0], [0], [1], [0, 0, 1, 1], [], []>} : vector<16x32xbf16>, vector<32x32xbf16>, vector<16x32xf32> -> vector<16x32xf32>
    %218 = arith.addf %182, %217 : vector<16x32xf32>
    %cst_79 = arith.constant dense<0.000000e+00> : vector<16xf32>
    %219 = vector.multi_reduction <add>, %218, %cst_79 [1] : vector<16x32xf32> to vector<16xf32>
    %220 = vector.shape_cast %219 : vector<16xf32> to vector<16x1xf32>
    %cst_80 = arith.constant 3.200000e+01 : f32
    %221 = vector.broadcast %cst_80 : f32 to vector<16x1xf32>
    %222 = arith.divf %220, %221 : vector<16x1xf32>
    %223 = vector.broadcast %222 : vector<16x1xf32> to vector<16x32xf32>
    %224 = arith.subf %218, %223 : vector<16x32xf32>
    %225 = arith.mulf %224, %224 : vector<16x32xf32>
    %cst_81 = arith.constant dense<0.000000e+00> : vector<16xf32>
    %226 = vector.multi_reduction <add>, %225, %cst_81 [1] : vector<16x32xf32> to vector<16xf32>
    %227 = vector.shape_cast %226 : vector<16xf32> to vector<16x1xf32>
    %cst_82 = arith.constant 3.200000e+01 : f32
    %228 = vector.broadcast %cst_82 : f32 to vector<16x1xf32>
    %229 = arith.divf %227, %228 : vector<16x1xf32>
    %230 = vector.broadcast %222 : vector<16x1xf32> to vector<16x32xf32>
    %231 = arith.subf %218, %230 : vector<16x32xf32>
    %cst_83 = arith.constant 9.99999974E-6 : f32
    %232 = vector.broadcast %cst_83 : f32 to vector<16x1xf32>
    %233 = arith.addf %229, %232 : vector<16x1xf32>
    %234 = math.rsqrt %233 : vector<16x1xf32>
    %235 = vector.broadcast %234 : vector<16x1xf32> to vector<16x32xf32>
    %236 = arith.mulf %231, %235 : vector<16x32xf32>
    %c536 = arith.constant 536 : index
    %c0_84 = arith.constant 0 : index
    %237 = vector.load %arg0[%c536, %c0_84] : memref<888x64xf32, #tpu.memory_space<vmem>>, vector<32x64xf32>
    %238 = arith.truncf %236 : vector<16x32xf32> to vector<16x32xbf16>
    %239 = arith.truncf %237 : vector<32x64xf32> to vector<32x64xbf16>
    %cst_85 = arith.constant dense<0.000000e+00> : vector<16x64xf32>
    %240 = tpu.matmul %238, %239, %cst_85 {dimension_numbers = #tpu.dot_dimension_numbers<[1], [0], [0], [1], [0, 0, 1, 1], [], []>} : vector<16x32xbf16>, vector<32x64xbf16>, vector<16x64xf32> -> vector<16x64xf32>
    %c568 = arith.constant 568 : index
    %c0_86 = arith.constant 0 : index
    %241 = vector.load %arg0[%c568, %c0_86] : memref<888x64xf32, #tpu.memory_space<vmem>>, vector<1x64xf32>
    %242 = vector.broadcast %241 : vector<1x64xf32> to vector<16x64xf32>
    %243 = arith.addf %240, %242 : vector<16x64xf32>
    %cst_87 = arith.constant 0.000000e+00 : f32
    %244 = vector.broadcast %cst_87 : f32 to vector<16x64xf32>
    %245 = arith.maximumf %243, %244 : vector<16x64xf32>
    %c576 = arith.constant 576 : index
    %c0_88 = arith.constant 0 : index
    %246 = vector.load %arg0[%c576, %c0_88] : memref<888x64xf32, #tpu.memory_space<vmem>>, vector<64x32xf32>
    %247 = arith.truncf %245 : vector<16x64xf32> to vector<16x64xbf16>
    %248 = arith.truncf %246 : vector<64x32xf32> to vector<64x32xbf16>
    %cst_89 = arith.constant dense<0.000000e+00> : vector<16x32xf32>
    %249 = tpu.matmul %247, %248, %cst_89 {dimension_numbers = #tpu.dot_dimension_numbers<[1], [0], [0], [1], [0, 0, 1, 1], [], []>} : vector<16x64xbf16>, vector<64x32xbf16>, vector<16x32xf32> -> vector<16x32xf32>
    %c640 = arith.constant 640 : index
    %c0_90 = arith.constant 0 : index
    %250 = vector.load %arg0[%c640, %c0_90] : memref<888x64xf32, #tpu.memory_space<vmem>>, vector<1x32xf32>
    %251 = vector.broadcast %250 : vector<1x32xf32> to vector<16x32xf32>
    %252 = arith.addf %249, %251 : vector<16x32xf32>
    %253 = arith.addf %236, %252 : vector<16x32xf32>
    %cst_91 = arith.constant dense<0.000000e+00> : vector<16xf32>
    %254 = vector.multi_reduction <add>, %253, %cst_91 [1] : vector<16x32xf32> to vector<16xf32>
    %255 = vector.shape_cast %254 : vector<16xf32> to vector<16x1xf32>
    %cst_92 = arith.constant 3.200000e+01 : f32
    %256 = vector.broadcast %cst_92 : f32 to vector<16x1xf32>
    %257 = arith.divf %255, %256 : vector<16x1xf32>
    %258 = vector.broadcast %257 : vector<16x1xf32> to vector<16x32xf32>
    %259 = arith.subf %253, %258 : vector<16x32xf32>
    %260 = arith.mulf %259, %259 : vector<16x32xf32>
    %cst_93 = arith.constant dense<0.000000e+00> : vector<16xf32>
    %261 = vector.multi_reduction <add>, %260, %cst_93 [1] : vector<16x32xf32> to vector<16xf32>
    %262 = vector.shape_cast %261 : vector<16xf32> to vector<16x1xf32>
    %cst_94 = arith.constant 3.200000e+01 : f32
    %263 = vector.broadcast %cst_94 : f32 to vector<16x1xf32>
    %264 = arith.divf %262, %263 : vector<16x1xf32>
    %265 = vector.broadcast %257 : vector<16x1xf32> to vector<16x32xf32>
    %266 = arith.subf %253, %265 : vector<16x32xf32>
    %cst_95 = arith.constant 9.99999974E-6 : f32
    %267 = vector.broadcast %cst_95 : f32 to vector<16x1xf32>
    %268 = arith.addf %264, %267 : vector<16x1xf32>
    %269 = math.rsqrt %268 : vector<16x1xf32>
    %270 = vector.broadcast %269 : vector<16x1xf32> to vector<16x32xf32>
    %271 = arith.mulf %266, %270 : vector<16x32xf32>
    %c648 = arith.constant 648 : index
    %c0_96 = arith.constant 0 : index
    %272 = vector.load %arg0[%c648, %c0_96] : memref<888x64xf32, #tpu.memory_space<vmem>>, vector<32x32xf32>
    %273 = arith.truncf %271 : vector<16x32xf32> to vector<16x32xbf16>
    %274 = arith.truncf %272 : vector<32x32xf32> to vector<32x32xbf16>
    %cst_97 = arith.constant dense<0.000000e+00> : vector<16x32xf32>
    %275 = tpu.matmul %273, %274, %cst_97 {dimension_numbers = #tpu.dot_dimension_numbers<[1], [0], [0], [1], [0, 0, 1, 1], [], []>} : vector<16x32xbf16>, vector<32x32xbf16>, vector<16x32xf32> -> vector<16x32xf32>
    %c680 = arith.constant 680 : index
    %c0_98 = arith.constant 0 : index
    %276 = vector.load %arg0[%c680, %c0_98] : memref<888x64xf32, #tpu.memory_space<vmem>>, vector<1x32xf32>
    %277 = vector.broadcast %276 : vector<1x32xf32> to vector<16x32xf32>
    %278 = arith.addf %275, %277 : vector<16x32xf32>
    %cst_99 = arith.constant 0.000000e+00 : f32
    %279 = vector.broadcast %cst_99 : f32 to vector<16x32xf32>
    %280 = arith.cmpf oge, %278, %279 : vector<16x32xf32>
    %cst_100 = arith.constant 0.00999999977 : f32
    %281 = vector.broadcast %cst_100 : f32 to vector<16x32xf32>
    %282 = arith.mulf %281, %278 : vector<16x32xf32>
    %283 = arith.select %280, %278, %282 : vector<16x32xi1>, vector<16x32xf32>
    %c688 = arith.constant 688 : index
    %c0_101 = arith.constant 0 : index
    %284 = vector.load %arg0[%c688, %c0_101] : memref<888x64xf32, #tpu.memory_space<vmem>>, vector<32x32xf32>
    %285 = arith.truncf %283 : vector<16x32xf32> to vector<16x32xbf16>
    %286 = arith.truncf %284 : vector<32x32xf32> to vector<32x32xbf16>
    %cst_102 = arith.constant dense<0.000000e+00> : vector<16x32xf32>
    %287 = tpu.matmul %285, %286, %cst_102 {dimension_numbers = #tpu.dot_dimension_numbers<[1], [0], [0], [1], [0, 0, 1, 1], [], []>} : vector<16x32xbf16>, vector<32x32xbf16>, vector<16x32xf32> -> vector<16x32xf32>
    %c720 = arith.constant 720 : index
    %c0_103 = arith.constant 0 : index
    %288 = vector.load %arg0[%c720, %c0_103] : memref<888x64xf32, #tpu.memory_space<vmem>>, vector<1x32xf32>
    %289 = vector.broadcast %288 : vector<1x32xf32> to vector<16x32xf32>
    %290 = arith.addf %287, %289 : vector<16x32xf32>
    %291 = vector.broadcast %1 : vector<16x1xf32> to vector<16x32xf32>
    %292 = arith.mulf %290, %291 : vector<16x32xf32>
    %293 = tpu.iota {dimensions = array<i32: 0>} : vector<2x16xi32>
    %294 = tpu.iota {dimensions = array<i32: 1>} : vector<2x16xi32>
    %c3_i32_104 = arith.constant 3 : i32
    %295 = vector.broadcast %c3_i32_104 : i32 to vector<2x16xi32>
    %296 = arith.shrsi %294, %295 : vector<2x16xi32>
    %297 = arith.cmpi eq, %293, %296 : vector<2x16xi32>
    %298 = arith.extui %297 : vector<2x16xi1> to vector<2x16xi32>
    %299 = arith.sitofp %298 : vector<2x16xi32> to vector<2x16xf32>
    %300 = arith.truncf %299 : vector<2x16xf32> to vector<2x16xbf16>
    %301 = arith.truncf %292 : vector<16x32xf32> to vector<16x32xbf16>
    %cst_105 = arith.constant dense<0.000000e+00> : vector<2x32xf32>
    %302 = tpu.matmul %300, %301, %cst_105 {dimension_numbers = #tpu.dot_dimension_numbers<[1], [0], [0], [1], [0, 0, 1, 1], [], []>} : vector<2x16xbf16>, vector<16x32xbf16>, vector<2x32xf32> -> vector<2x32xf32>
    %303 = vector.shape_cast %2 : vector<1x16xf32> to vector<1x16xf32>
    %304 = vector.broadcast %303 : vector<1x16xf32> to vector<2x16xf32>
    %305 = arith.mulf %299, %304 : vector<2x16xf32>
    %cst_106 = arith.constant dense<0.000000e+00> : vector<2xf32>
    %306 = vector.multi_reduction <add>, %305, %cst_106 [1] : vector<2x16xf32> to vector<2xf32>
    %307 = vector.shape_cast %306 : vector<2xf32> to vector<2x1xf32>
    %cst_107 = arith.constant 9.99999974E-5 : f32
    %308 = vector.broadcast %cst_107 : f32 to vector<2x1xf32>
    %309 = arith.addf %307, %308 : vector<2x1xf32>
    %310 = tpu.reciprocal %309 {approx = true} : vector<2x1xf32> -> vector<2x1xf32>
    %311 = vector.broadcast %310 : vector<2x1xf32> to vector<2x32xf32>
    %312 = arith.mulf %302, %311 : vector<2x32xf32>
    %c728 = arith.constant 728 : index
    %c0_108 = arith.constant 0 : index
    %313 = vector.load %arg0[%c728, %c0_108] : memref<888x64xf32, #tpu.memory_space<vmem>>, vector<32x32xf32>
    %314 = arith.truncf %312 : vector<2x32xf32> to vector<2x32xbf16>
    %315 = arith.truncf %313 : vector<32x32xf32> to vector<32x32xbf16>
    %cst_109 = arith.constant dense<0.000000e+00> : vector<2x32xf32>
    %316 = tpu.matmul %314, %315, %cst_109 {dimension_numbers = #tpu.dot_dimension_numbers<[1], [0], [0], [1], [0, 0, 1, 1], [], []>} : vector<2x32xbf16>, vector<32x32xbf16>, vector<2x32xf32> -> vector<2x32xf32>
    %c760 = arith.constant 760 : index
    %c0_110 = arith.constant 0 : index
    %317 = vector.load %arg0[%c760, %c0_110] : memref<888x64xf32, #tpu.memory_space<vmem>>, vector<1x32xf32>
    %318 = vector.broadcast %317 : vector<1x32xf32> to vector<2x32xf32>
    %319 = arith.addf %316, %318 : vector<2x32xf32>
    %cst_111 = arith.constant 0.000000e+00 : f32
    %320 = vector.broadcast %cst_111 : f32 to vector<2x32xf32>
    %321 = arith.cmpf oge, %319, %320 : vector<2x32xf32>
    %cst_112 = arith.constant 0.000000e+00 : f32
    %322 = vector.broadcast %cst_112 : f32 to vector<2x32xf32>
    %323 = arith.mulf %322, %319 : vector<2x32xf32>
    %324 = arith.select %321, %319, %323 : vector<2x32xi1>, vector<2x32xf32>
    %c768 = arith.constant 768 : index
    %c0_113 = arith.constant 0 : index
    %325 = vector.load %arg0[%c768, %c0_113] : memref<888x64xf32, #tpu.memory_space<vmem>>, vector<32x16xf32>
    %326 = arith.truncf %324 : vector<2x32xf32> to vector<2x32xbf16>
    %327 = arith.truncf %325 : vector<32x16xf32> to vector<32x16xbf16>
    %cst_114 = arith.constant dense<0.000000e+00> : vector<2x16xf32>
    %328 = tpu.matmul %326, %327, %cst_114 {dimension_numbers = #tpu.dot_dimension_numbers<[1], [0], [0], [1], [0, 0, 1, 1], [], []>} : vector<2x32xbf16>, vector<32x16xbf16>, vector<2x16xf32> -> vector<2x16xf32>
    %c800 = arith.constant 800 : index
    %c0_115 = arith.constant 0 : index
    %329 = vector.load %arg0[%c800, %c0_115] : memref<888x64xf32, #tpu.memory_space<vmem>>, vector<1x16xf32>
    %330 = vector.broadcast %329 : vector<1x16xf32> to vector<2x16xf32>
    %331 = arith.addf %328, %330 : vector<2x16xf32>
    %c808 = arith.constant 808 : index
    %c0_116 = arith.constant 0 : index
    %332 = vector.load %arg0[%c808, %c0_116] : memref<888x64xf32, #tpu.memory_space<vmem>>, vector<32x32xf32>
    %333 = arith.truncf %292 : vector<16x32xf32> to vector<16x32xbf16>
    %334 = arith.truncf %332 : vector<32x32xf32> to vector<32x32xbf16>
    %cst_117 = arith.constant dense<0.000000e+00> : vector<16x32xf32>
    %335 = tpu.matmul %333, %334, %cst_117 {dimension_numbers = #tpu.dot_dimension_numbers<[1], [0], [0], [1], [0, 0, 1, 1], [], []>} : vector<16x32xbf16>, vector<32x32xbf16>, vector<16x32xf32> -> vector<16x32xf32>
    %c840 = arith.constant 840 : index
    %c0_118 = arith.constant 0 : index
    %336 = vector.load %arg0[%c840, %c0_118] : memref<888x64xf32, #tpu.memory_space<vmem>>, vector<1x32xf32>
    %337 = vector.broadcast %336 : vector<1x32xf32> to vector<16x32xf32>
    %338 = arith.addf %335, %337 : vector<16x32xf32>
    %cst_119 = arith.constant 0.000000e+00 : f32
    %339 = vector.broadcast %cst_119 : f32 to vector<16x32xf32>
    %340 = arith.cmpf oge, %338, %339 : vector<16x32xf32>
    %cst_120 = arith.constant 0.000000e+00 : f32
    %341 = vector.broadcast %cst_120 : f32 to vector<16x32xf32>
    %342 = arith.mulf %341, %338 : vector<16x32xf32>
    %343 = arith.select %340, %338, %342 : vector<16x32xi1>, vector<16x32xf32>
    %c848 = arith.constant 848 : index
    %c0_121 = arith.constant 0 : index
    %344 = vector.load %arg0[%c848, %c0_121] : memref<888x64xf32, #tpu.memory_space<vmem>>, vector<32x16xf32>
    %345 = arith.truncf %343 : vector<16x32xf32> to vector<16x32xbf16>
    %346 = arith.truncf %344 : vector<32x16xf32> to vector<32x16xbf16>
    %cst_122 = arith.constant dense<0.000000e+00> : vector<16x16xf32>
    %347 = tpu.matmul %345, %346, %cst_122 {dimension_numbers = #tpu.dot_dimension_numbers<[1], [0], [0], [1], [0, 0, 1, 1], [], []>} : vector<16x32xbf16>, vector<32x16xbf16>, vector<16x16xf32> -> vector<16x16xf32>
    %c880 = arith.constant 880 : index
    %c0_123 = arith.constant 0 : index
    %348 = vector.load %arg0[%c880, %c0_123] : memref<888x64xf32, #tpu.memory_space<vmem>>, vector<1x16xf32>
    %349 = vector.broadcast %348 : vector<1x16xf32> to vector<16x16xf32>
    %350 = arith.addf %347, %349 : vector<16x16xf32>
    %351 = vector.shape_cast %350 : vector<16x16xf32> to vector<2x8x16xf32>
    %cst_124 = arith.constant dense<0.000000e+00> : vector<2x16xf32>
    %352 = vector.multi_reduction <add>, %351, %cst_124 [1] : vector<2x8x16xf32> to vector<2x16xf32>
    %353 = vector.shape_cast %352 : vector<2x16xf32> to vector<2x1x16xf32>
    %cst_125 = arith.constant 1.250000e-01 : f32
    %354 = vector.broadcast %cst_125 : f32 to vector<2x1x16xf32>
    %355 = arith.mulf %353, %354 : vector<2x1x16xf32>
    %356 = vector.shape_cast %331 : vector<2x16xf32> to vector<2x1x16xf32>
    %357 = vector.broadcast %356 : vector<2x1x16xf32> to vector<2x8x16xf32>
    %358 = arith.addf %357, %351 : vector<2x8x16xf32>
    %359 = vector.broadcast %355 : vector<2x1x16xf32> to vector<2x8x16xf32>
    %360 = arith.subf %358, %359 : vector<2x8x16xf32>
    %cst_126 = arith.constant dense<0xFF800000> : vector<2x8xf32>
    %361 = vector.multi_reduction <maximumf>, %360, %cst_126 [2] : vector<2x8x16xf32> to vector<2x8xf32>
    %362 = vector.shape_cast %361 : vector<2x8xf32> to vector<2x8x1xf32>
    %363 = vector.broadcast %362 : vector<2x8x1xf32> to vector<2x8x16xf32>
    %364 = arith.subf %360, %363 : vector<2x8x16xf32>
    %365 = math.exp %364 : vector<2x8x16xf32>
    %cst_127 = arith.constant dense<0.000000e+00> : vector<2x8xf32>
    %366 = vector.multi_reduction <add>, %365, %cst_127 [2] : vector<2x8x16xf32> to vector<2x8xf32>
    %367 = vector.shape_cast %366 : vector<2x8xf32> to vector<2x8x1xf32>
    %368 = tpu.reciprocal %367 {approx = true} : vector<2x8x1xf32> -> vector<2x8x1xf32>
    %369 = vector.broadcast %368 : vector<2x8x1xf32> to vector<2x8x16xf32>
    %370 = arith.mulf %365, %369 : vector<2x8x16xf32>
    %371 = vector.extract_strided_slice %370 {offsets = [0, 4, 0], sizes = [2, 3, 16], strides = [1, 1, 1]} : vector<2x8x16xf32> to vector<2x3x16xf32>
    %c0_128 = arith.constant 0 : index
    %c0_129 = arith.constant 0 : index
    %c0_130 = arith.constant 0 : index
    %372 = vector.load %arg4[%c0_128, %c0_129, %c0_130] : memref<2x3x16xf32, #tpu.memory_space<vmem>>, vector<2x3x16xf32>
    tpu.vector_store %arg4[%c0_128, %c0_129, %c0_130], %371 {strides = array<i32>} : memref<2x3x16xf32, #tpu.memory_space<vmem>>, vector<2x3x16xf32>,
    return
  }
}

</mosaic_0001>

<bundles_post_ra>
// kernel: squeeze.1
= control target key start
LH: loop header
LB: loop body
LE: loop exit
PB: predicated region body
PF: predicated region fallthrough
CT: control target
= control target key end

     0   :  { %vm7_vm0 = vcmask 64512   ;;  %vm13_vm1 = vcmask 130112   ;;  %s39_s0 = inlined_call_operand.vmem [shape: f32[2,8], index: 0, kind: input, shape index: {}]   ;;  %s40_s1 = inlined_call_operand.vmem [shape: f32[1,16], index: 1, kind: output, shape index: {}]  }
   0x1   :  { %v4_v0 = vld [vmem:[%s39_s0] sm:$0x3]  ;;  %s22_s0 = smov 8  }
   0x2   :  { %5 = vst [vmem:[#allocation1] sm:$0x3] %v4_v0 }
   0x9   :  { %v10_v1 = vld [vmem:[#allocation1 + $0x1] sm:$0x1]   ;;  %v6_v2 = vld [vmem:[#allocation1] sm:$0x1]  }
   0xa   :  { %11 = vrot.lane.b32.xlu0 %v10_v1, %s22_s0  ;;  %8 = vst.msk [vmem:[#allocation0] sm:$0x1] %vm7_vm0, %v6_v2  }
  0x7c   :  { %v12_v3 = vpop.permute.xlu0 %11  }
  0x7d   :  { %14 = vst.msk [vmem:[#allocation0] sm:$0x1] %vm13_vm1, %v12_v3  }
  0x84   :  { %v17_v4 = vld [vmem:[#allocation0] sm:$0x1] }
  0x85   :  { %20 = vst [vmem:[%s40_s1] sm:$0x1] %v17_v4 }

// kernel: attention_model_forward.1
= control target key start
LH: loop header
LB: loop body
LE: loop exit
PB: predicated region body
PF: predicated region fallthrough
CT: control target
= control target key end

     0   :  { %vm32_vm0 = vcmask 1042432   ;;  %vm90_vm1 = vcmask 1043456   ;;  %vm28_vm2 = vcmask 48128   ;;  %vm87_vm3 = vcmask 64512   ;;  %s1718_s0 = inlined_call_operand.vmem [shape: f32[888,64], index: 0, kind: input, shape index: {}]   ;;  %s1719_s1 = inlined_call_operand.vmem [shape: f32[16,9], index: 1, kind: input, shape index: {}]   ;;  %s1720_s3 = inlined_call_operand.vmem [shape: f32[1,16], index: 3, kind: input, shape index: {}]   ;;  %s1721_s2 = inlined_call_operand.vmem [shape: f32[16,1], index: 2, kind: input, shape index: {}]   ;;  %s1722_s4 = inlined_call_operand.vmem [shape: f32[2,3,16], index: 4, kind: output, shape index: {}]  }
   0x1   :  { %v23_v0 = vld [vmem:[%s1718_s0] sm:$0x3f]  ;;  %v83_v1 = vld [vmem:[%s1718_s0 + $0x38] sm:$0xff]  ;;  %v19_v5 = vld [vmem:[%s1719_s1 + $0x8] sm:$0xff]  ;;  %vm65_vm6 = vcmask 261120  }
   0x2   :  { %v18_v2 = vld [vmem:[%s1719_s1] sm:$0xff]  ;;  %v25_v3 = vpack.c.bf16 %v23_v0, %v23_v0  ;;  %v84_v4 = vpack.c.bf16 %v83_v1, %v83_v1  ;;  %v140_v6 = vld [vmem:[%s1718_s0 + $0x70] sm:$0x3f]  ;;  %v59_v13 = vld [vmem:[%s1718_s0 + $0x28] sm:$0xff] }
   0x3   :  { %v141_v7 = vpack.c.bf16 %v140_v6, %v140_v6  ;;  %v24_v10 = vpack.c.bf16 %v19_v5, %v18_v2  ;;  %v58_v12 = vld [vmem:[%s1718_s0 + $0x20] sm:$0xff]  ;;  %v56_v15 = vld [vmem:[%s1718_s0 + $0x10] sm:$0xff]  ;;  %v57_v16 = vld [vmem:[%s1718_s0 + $0x18] sm:$0xff] }
   0x4   :  { %v34_v8 = vsel %vm32_vm0, %v25_v3, 0  ;;  %v92_v9 = vsel %vm90_vm1, %v84_v4, 0  ;;  %v62_v14 = vpack.c.bf16 %v59_v13, %v58_v12  ;;  %v61_v17 = vpack.c.bf16 %v57_v16, %v56_v15  ;;  %v116_v18 = vld [vmem:[%s1718_s0 + $0x58] sm:$0xff]  ;;  %v117_v19 = vld [vmem:[%s1718_s0 + $0x60] sm:$0xff]  ;;  %v114_v21 = vld [vmem:[%s1718_s0 + $0x48] sm:$0xff] }
   0x5   :  { %43 = vmatpush.bf16.msra.mxu0 %v34_v8  ;;  %101 = vmatpush.bf16.msra.mxu2 %v92_v9  ;;  %v145_v11 = vsel %vm32_vm0, %v141_v7, 0  ;;  %v120_v20 = vpack.c.bf16 %v117_v19, %v116_v18  ;;  %v115_v22 = vld [vmem:[%s1718_s0 + $0x50] sm:$0xff]  ;;  %v170_v25 = vld [vmem:[%s1718_s0 + $0x98] sm:$0xff]  ;;  %v167_v27 = vld [vmem:[%s1718_s0 + $0x80] sm:$0xff] }
   0x6   :  { %75 = vmatpush.bf16.msra.mxu1 %v62_v14  ;;  %v119_v23 = vpack.c.bf16 %v115_v22, %v114_v21  ;;  %v169_v24 = vld [vmem:[%s1718_s0 + $0x90] sm:$0xff]  ;;  %v168_v28 = vld [vmem:[%s1718_s0 + $0x88] sm:$0xff]  ;;  %v1153_v33 = vld [vmem:[%s1718_s0 + $0x40] ss:$0 sm:$0xff]  ;;  %v193_v14 = vlaneseq }
   0x7   :  { %132 = vmatpush.bf16.msra.mxu3 %v120_v20  ;;  %v173_v26 = vpack.c.bf16 %v170_v25, %v169_v24  ;;  %v172_v29 = vpack.c.bf16 %v168_v28, %v167_v27  ;;  %v1152_v31 = vld [vmem:[%s1718_s0 + $0x8] ss:$0 sm:$0xff]  ;;  %v1154_v48 = vld [vmem:[%s1718_s0 + $0x78] ss:$0 sm:$0xff]  ;;  %v232_v61 = vld [vmem:[%s1718_s0 + $0xc0] sm:$0xff] }
   0x8   :  { %1116 = vmatmul.msk.bf16.vlgmr.msra.gmra.mxu0 %vm28_vm2, %v24_v10  ;;  %1118 = vmatmul.msk.bf16.vlgmr.msra.gmra.mxu2 %vm87_vm3, %v24_v10  ;;  %v231_v60 = vld [vmem:[%s1718_s0 + $0xb8] sm:$0xff]  ;;  %v256_v0 = vld [vmem:[%s1718_s0 + $0xe0] sm:$0xff]  ;;  %v229_v5 = vld [vmem:[%s1718_s0 + $0xa8] sm:$0xff] }
   0x9   :  { %154 = vmatpush.bf16.msrb.mxu0 %v145_v11  ;;  %185 = vmatpush.bf16.msrb.mxu2 %v173_v26  ;;  %v255_v62 = vld [vmem:[%s1718_s0 + $0xd8] sm:$0xff]  ;;  %v235_v63 = vpack.c.bf16 %v232_v61, %v231_v60  ;;  %v276_v2 = vld [vmem:[%s1718_s0 + $0x100] sm:$0xff]  ;;  %v230_v6 = vld [vmem:[%s1718_s0 + $0xb0] sm:$0xff] }
   0xa   :  { %76 = vmatpush.bf16.msra.mxu1 %v61_v17  ;;  %v275_v1 = vld [vmem:[%s1718_s0 + $0xf8] sm:$0xff]  ;;  %v258_v3 = vpack.c.bf16 %v256_v0, %v255_v62  ;;  %v253_v7 = vld [vmem:[%s1718_s0 + $0xc8] sm:$0xff]  ;;  %v234_v8 = vpack.c.bf16 %v230_v6, %v229_v5  ;;  %v254_v9 = vld [vmem:[%s1718_s0 + $0xd0] sm:$0xff]  ;;  %v1343_v17 = vshrl.u32 %v193_v14, 7 }
   0xb   :  { %133 = vmatpush.bf16.msra.mxu3 %v119_v23  ;;  %v278_v4 = vpack.c.bf16 %v276_v2, %v275_v1  ;;  %v274_v11 = vld [vmem:[%s1718_s0 + $0xf0] sm:$0xff]  ;;  %v257_v12 = vpack.c.bf16 %v254_v9, %v253_v7  ;;  %v1157_v20 = vld [vmem:[%s1718_s0 + $0xa0] ss:$0 sm:$0xff]  ;;  %v1156_v22 = vld [vmem:[%s1718_s0 + $0x68] ss:$0 sm:$0xff] }
   0xc   :  { %v195_v19 = vadd.s32 8, %v1343_v17  ;;  %v196_v21 = vand.u32 7, %v1343_v17  ;;  %v1155_v25 = vld [vmem:[%s1718_s0 + $0x30] ss:$0 sm:$0xff] }
   0xd   :  { %186 = vmatpush.bf16.msrb.mxu2 %v172_v29  ;;  %285 = vmatpush.bf16.msra.mxu0 %v278_v4 }
   0xe   :  { %245 = vmatpush.bf16.msrb.mxu1 %v235_v63  ;;  %v197_v23 = vand.u32 7, %v195_v19  ;;  %vm200_vm11 = vcmp.lt.s32.totalorder %v196_v21, 7  ;;  %vm198_vm12 = vcmp.lt.s32.totalorder %v196_v21, 4 }
   0xf   :  { %265 = vmatpush.bf16.msrb.mxu3 %v258_v3 }
  0x10   :  { %vm201_vm13 = vcmp.lt.s32.totalorder %v197_v23, 7  ;;  %vm199_vm14 = vcmp.lt.s32.totalorder %v197_v23, 4  ;;  %v362_v23 = vld [vmem:[%s1718_s0 + $0x110] sm:$0xff] }
  0x12   :  { %246 = vmatpush.bf16.msrb.mxu1 %v234_v8 }
  0x13   :  { %266 = vmatpush.bf16.msrb.mxu3 %v257_v12 }
  0x18   :  { %1120 = vmatmul.msk.bf16.vlgmr.msrb.gmra.mxu0 %vm28_vm2, %v24_v10  ;;  %v273_v10 = vld [vmem:[%s1718_s0 + $0xe8] sm:$0xff]  ;;  %vm319_vm2 = vcmask 130048  }
  0x19   :  { %v277_v13 = vpack.c.bf16 %v274_v11, %v273_v10 }
  0x1b   :  { %286 = vmatpush.bf16.msra.mxu0 %v277_v13 }
  0x85   :  { %v45_v30 = vpop.f32.mrf.mxu0 }
  0x86   :  { %v46_v32 = vadd.f32 %v1152_v31, %v45_v30 }
  0x88   :  { %v52_v36 = vmul.f32 0.01, %v46_v32  ;;  %vm50_vm4 = vcmp.ge.f32.partialorder %v46_v32, 0.0 }
  0x8a   :  { %v54_v41 = vsel %vm50_vm4, %v46_v32, %v52_v36 }
  0x8b   :  { %v103_v34 = vpop.f32.mrf.mxu2 }
  0x8c   :  { %v104_v37 = vadd.f32 %v1153_v33, %v103_v34 }
  0x8d   :  { %v47_v35 = vpop.f32.mrf.mxu0 }
  0x8e   :  { %v48_v38 = vadd.f32 %v1152_v31, %v47_v35  ;;  %v110_v40 = vmul.f32 0.01, %v104_v37  ;;  %vm108_vm7 = vcmp.ge.f32.partialorder %v104_v37, 0.0 }
  0x90   :  { %vm51_vm5 = vcmp.ge.f32.partialorder %v48_v38, 0.0  ;;  %v53_v39 = vmul.f32 0.01, %v48_v38  ;;  %v112_v49 = vsel %vm108_vm7, %v104_v37, %v110_v40 }
  0x92   :  { %v55_v42 = vsel %vm51_vm5, %v48_v38, %v53_v39 }
  0x93   :  { %v105_v43 = vpop.f32.mrf.mxu2  ;;  %v60_v44 = vpack.c.bf16 %v55_v42, %v54_v41 }
  0x94   :  { %v106_v45 = vadd.f32 %v1153_v33, %v105_v43 }
  0x95   :  { %1117 = vmatmul.msk.bf16.vlgmr.msra.gmra.mxu1 %vm65_vm6, %v60_v44  ;;  %v156_v46 = vpop.f32.mrf.mxu0 }
  0x96   :  { %vm109_vm8 = vcmp.ge.f32.partialorder %v106_v45, 0.0  ;;  %v111_v47 = vmul.f32 0.01, %v106_v45  ;;  %v157_v52 = vadd.f32 %v1154_v48, %v156_v46 }
  0x98   :  { %v113_v50 = vsel %vm109_vm8, %v106_v45, %v111_v47  ;;  %v163_v54 = vmul.f32 0.01, %v157_v52  ;;  %vm161_vm9 = vcmp.ge.f32.partialorder %v157_v52, 0.0 }
  0x99   :  { %v118_v51 = vpack.c.bf16 %v113_v50, %v112_v49  ;;  %v215_v49 = vand.u32 127, %v193_v14  ;;  %v216_v50 = vshra.s32 %v1343_v17, 3 }
  0x9a   :  { %v165_v57 = vsel %vm161_vm9, %v157_v52, %v163_v54  ;;  %v1373_v52 = vld [vmem:[%s1720_s3] ss:$0 sm:$0xff] }
  0x9b   :  { %1119 = vmatmul.msk.bf16.vlgmr.msra.gmra.mxu3 %vm65_vm6, %v118_v51  ;;  %v1368_v51 = vshra.s32 %v215_v49, 3  ;;  %vm224_vm0 = vcmp.ge.f32.partialorder %v1373_v52, 0.5 }
  0x9d   :  { %v158_v53 = vpop.f32.mrf.mxu0  ;;  %vm219_vm15 = vcmp.eq.s32.totalorder %v216_v50, %v1368_v51 }
  0x9e   :  { %v159_v55 = vadd.f32 %v1154_v48, %v158_v53  ;;  %vm225_vm1 = vmand %vm219_vm15, %vm224_vm0  ;;  %v217_v53 = vshra.s32 %v195_v19, 3  ;;  %v363_v19 = vld [vmem:[%s1718_s0 + $0x118] sm:$0xff] }
  0xa0   :  { %vm162_vm10 = vcmp.ge.f32.partialorder %v159_v55, 0.0  ;;  %v164_v56 = vmul.f32 0.01, %v159_v55  ;;  %vm220_vm3 = vcmp.eq.s32.totalorder %v217_v53, %v1368_v51  ;;  %v440_v53 = vld [vmem:[%s1718_s0 + $0x138] sm:$0xff] }
  0xa1   :  { %vm226_vm4 = vmand %vm220_vm3, %vm224_vm0 }
  0xa2   :  { %v166_v58 = vsel %vm162_vm10, %v159_v55, %v164_v56  ;;  %v1213_v55 = vmov -1e+09  }
  0xa3   :  { %v171_v59 = vpack.c.bf16 %v166_v58, %v165_v57  ;;  %v1377_v56 = vsel %vm225_vm1, 0.0, %v1213_v55  ;;  %v1382_v61 = vsel %vm226_vm4, 0.0, %v1213_v55 }
  0xa5   :  { %1121 = vmatmul.msk.bf16.vlgmr.msrb.gmra.mxu2 %vm65_vm6, %v171_v59 }
 0x112   :  { %v78_v16 = vpop.f32.mrf.mxu1 }
 0x113   :  { %v79_v33 = vadd.f32 %v1155_v25, %v78_v16 }
 0x11a   :  { %v80_v27 = vpop.f32.mrf.mxu1 }
 0x11b   :  { %v81_v34 = vadd.f32 %v1155_v25, %v80_v27 }
 0x11e   :  { %v135_v15 = vpop.f32.mrf.mxu3 }
 0x11f   :  { %v136_v28 = vadd.f32 %v1156_v22, %v135_v15 }
 0x126   :  { %v137_v26 = vpop.f32.mrf.mxu3 }
 0x127   :  { %v138_v30 = vadd.f32 %v1156_v22, %v137_v26  ;;  %v361_v22 = vld [vmem:[%s1718_s0 + $0x108] sm:$0xff] }
 0x128   :  { %v188_v18 = vpop.f32.mrf.mxu2 }
 0x129   :  { %v189_v24 = vadd.f32 %v1157_v20, %v188_v18 }
 0x12b   :  { %v206_v31 = vsel %vm200_vm11, %v136_v28, %v189_v24  ;;  %v366_v24 = vpack.c.bf16 %v362_v23, %v361_v22  ;;  %v473_v22 = vld [vmem:[%s1718_s0 + $0x188] sm:$0xff] }
 0x12c   :  { %v1356_v36 = vsel %vm198_vm12, %v79_v33, %v206_v31 }
 0x130   :  { %v190_v29 = vpop.f32.mrf.mxu2 }
 0x131   :  { %v191_v32 = vadd.f32 %v1157_v20, %v190_v29  ;;  %v364_v20 = vld [vmem:[%s1718_s0 + $0x120] sm:$0xff] }
 0x132   :  { %v367_v21 = vpack.c.bf16 %v364_v20, %v363_v19 }
 0x133   :  { %v207_v35 = vsel %vm201_vm13, %v138_v30, %v191_v32  ;;  %vm481_vm13 = vcmask 523264  }
 0x134   :  { %v1358_v37 = vsel %vm199_vm14, %v81_v34, %v207_v35  ;;  %377 = vmatpush.bf16.msra.mxu3 %v367_v21  ;;  %v1214_v34 = vmov 32.0   ;;  %v472_v21 = vld [vmem:[%s1718_s0 + $0x180] sm:$0xff] }
 0x135   :  { %v233_v38 = vpack.c.bf16 %v1358_v37, %v1356_v36  ;;  %v478_v23 = vpack.c.bf16 %v473_v22, %v472_v21 }
 0x137   :  { %1122 = vmatmul.msk.bf16.vlgmr.msrb.gmra.mxu1 %vm65_vm6, %v233_v38  ;;  %1123 = vmatmul.msk.bf16.vlgmr.msrb.gmra.mxu3 %vm65_vm6, %v233_v38 }
 0x138   :  { %1124 = vmatmul.msk.bf16.vlgmr.msra.gmra.mxu0 %vm65_vm6, %v233_v38  ;;  %378 = vmatpush.bf16.msra.mxu3 %v366_v24  ;;  %v470_v24 = vld [vmem:[%s1718_s0 + $0x170] sm:$0xff] }
 0x1b4   :  { %v248_v42 = vpop.f32.mrf.mxu1 }
 0x1b5   :  { %v288_v39 = vpop.f32.mrf.mxu0 }
 0x1ba   :  { %v268_v40 = vpop.f32.mrf.mxu3 }
 0x1bc   :  { %v250_v47 = vpop.f32.mrf.mxu1 }
 0x1bd   :  { %v290_v41 = vpop.f32.mrf.mxu0  ;;  %v293_v48 = vpack.c.bf16 %v250_v47, %v248_v42 }
 0x1be   :  { %v343_v43 = vpack.c.bf16 %v290_v41, %v288_v39 }
 0x1c0   :  { %354 = vmatpush.bf16.msra.mxu1 %v343_v43 }
 0x1c2   :  { %v270_v44 = vpop.f32.mrf.mxu3 }
 0x1c3   :  { %v294_v45 = vpack.c.bf16 %v270_v44, %v268_v40 }
 0x1c5   :  { %v299_v46 = vsel %vm65_vm6, %v294_v45, 0 }
 0x1c6   :  { %308 = vmatpush.bf16.xpose.msra.mxu2 %v299_v46 }
 0x1cd   :  { %1125 = vmatmul.msk.bf16.vlgmr.msra.gmra.mxu2 %vm65_vm6, %v293_v48 }
 0x1ce   :  { %489 = vmatpush.bf16.msrb.mxu2 %v478_v23 }
 0x250   :  { %v310_v54 = vpop.f32.mrf.mxu2 }
 0x251   :  { %v315_v57 = vmul.f32 0.17677669, %v310_v54  ;;  %v441_v54 = vld [vmem:[%s1718_s0 + $0x140] sm:$0xff] }
 0x252   :  { %v444_v55 = vpack.c.bf16 %v441_v54, %v440_v53 }
 0x253   :  { %v317_v58 = vadd.f32 %v315_v57, %v1377_v56  ;;  %v438_v57 = vld [vmem:[%s1718_s0 + $0x128] sm:$0xff] }
 0x254   :  { %456 = vmatpush.bf16.msrb.mxu0 %v444_v55 }
 0x255   :  { %v320_v59 = vsel %vm319_vm2, %v317_v58, -inf }
 0x256   :  { %321 = vmax.xlane.f32.xlu0 %v320_v59 }
 0x258   :  { %v312_v60 = vpop.f32.mrf.mxu2 }
 0x259   :  { %v316_v62 = vmul.f32 0.17677669, %v312_v60 }
 0x25b   :  { %v318_v63 = vadd.f32 %v316_v62, %v1382_v61 }
 0x25d   :  { %v323_v0 = vsel %vm319_vm2, %v318_v63, -inf }
 0x25e   :  { %324 = vmax.xlane.f32.xlu0 %v323_v0 }
 0x2c9   :  { %v322_v1 = vpop.xlane.xlu0 %321 }
 0x2ca   :  { %v326_v2 = vsub.f32 %v317_v58, %v322_v1  ;;  %v439_v58 = vld [vmem:[%s1718_s0 + $0x130] sm:$0xff] }
 0x2cb   :  { %v443_v59 = vpack.c.bf16 %v439_v58, %v438_v57 }
 0x2cc   :  { %v328_v3 = vmul.f32 1.442695, %v326_v2 }
 0x2cd   :  { %457 = vmatpush.bf16.msrb.mxu0 %v443_v59 }
 0x2ce   :  { %1169 = vpow2.f32 %v328_v3 }
 0x2d1   :  { %v325_v4 = vpop.xlane.xlu0 %324 }
 0x2d2   :  { %v327_v5 = vsub.f32 %v318_v63, %v325_v4 }
 0x2d4   :  { %v1170_v6 = vpop.eup %1169  ;;  %v330_v7 = vmul.f32 1.442695, %v327_v5 }
 0x2d5   :  { %v332_v8 = vsel %vm319_vm2, %v1170_v6, 0.0 }
 0x2d6   :  { %1171 = vpow2.f32 %v330_v7  ;;  %333 = vadd.xlane.f32.xlu1 %v332_v8 }
 0x2dc   :  { %v1172_v9 = vpop.eup %1171 }
 0x2dd   :  { %v335_v10 = vsel %vm319_vm2, %v1172_v9, 0.0 }
 0x2de   :  { %336 = vadd.xlane.f32.xlu1 %v335_v10 }
 0x349   :  { %v334_v11 = vpop.xlane.xlu1 %333 }
 0x34a   :  { %1173 = vrcp.f32 %v334_v11 }
 0x350   :  { %v1174_v13 = vpop.eup %1173 }
 0x351   :  { %v337_v12 = vpop.xlane.xlu1 %336  ;;  %v340_v15 = vmul.f32 %v1174_v13, %v1170_v6 }
 0x352   :  { %1175 = vrcp.f32 %v337_v12 }
 0x353   :  { %1177 = vrcp.f32 %v1214_v34  ;;  %v1159_v34 = vld [vmem:[%s1718_s0 + $0x148] ss:$0 sm:$0xff] }
 0x358   :  { %v1176_v14 = vpop.eup %1175 }
 0x359   :  { %v341_v16 = vmul.f32 %v1176_v14, %v1172_v9  ;;  %v1178_v35 = vpop.eup %1177 }
 0x35a   :  { %v394_v38 = vmul.f32 32.0, %v1178_v35  ;;  %vm398_vm5 = vweird.f32 %v1178_v35 }
 0x35b   :  { %v342_v18 = vpack.c.bf16 %v341_v16, %v340_v15 }
 0x35c   :  { %v395_v39 = vsub.f32 1.0, %v394_v38 }
 0x35d   :  { %1126 = vmatmul.msk.bf16.vlgmr.msra.gmra.mxu1 %vm319_vm2, %v342_v18 }
 0x35e   :  { %v396_v40 = vmul.f32 %v1178_v35, %v395_v39 }
 0x360   :  { %v397_v41 = vadd.f32 %v1178_v35, %v396_v40 }
 0x362   :  { %v1406_v42 = vsel %vm398_vm5, %v1178_v35, %v397_v41 }
 0x3da   :  { %v356_v25 = vpop.f32.mrf.mxu1 }
 0x3e2   :  { %v358_v26 = vpop.f32.mrf.mxu1 }
 0x3e3   :  { %v365_v27 = vpack.c.bf16 %v358_v26, %v356_v25  ;;  %v471_v25 = vld [vmem:[%s1718_s0 + $0x178] sm:$0xff] }
 0x3e4   :  { %v477_v26 = vpack.c.bf16 %v471_v25, %v470_v24 }
 0x3e5   :  { %1127 = vmatmul.msk.bf16.vlgmr.msra.gmra.mxu3 %vm65_vm6, %v365_v27  ;;  %v468_v27 = vld [vmem:[%s1718_s0 + $0x160] sm:$0xff] }
 0x3e6   :  { %490 = vmatpush.bf16.msrb.mxu2 %v477_v26 }
 0x468   :  { %v380_v28 = vpop.f32.mrf.mxu3 }
 0x469   :  { %v385_v29 = vadd.f32 %v380_v28, %v1356_v36  ;;  %v469_v28 = vld [vmem:[%s1718_s0 + $0x168] sm:$0xff] }
 0x46b   :  { %v387_v30 = vsel %vm65_vm6, %v385_v29, 0.0 }
 0x46c   :  { %388 = vadd.xlane.f32.xlu2 %v387_v30  ;;  %v466_v30 = vld [vmem:[%s1718_s0 + $0x150] sm:$0xff] }
 0x470   :  { %v382_v31 = vpop.f32.mrf.mxu3 }
 0x471   :  { %v386_v32 = vadd.f32 %v382_v31, %v1358_v37  ;;  %v467_v31 = vld [vmem:[%s1718_s0 + $0x158] sm:$0xff] }
 0x473   :  { %v390_v33 = vsel %vm65_vm6, %v386_v32, 0.0 }
 0x474   :  { %391 = vadd.xlane.f32.xlu2 %v390_v33 }
 0x4df   :  { %v389_v36 = vpop.xlane.xlu2 %388 }
 0x4e0   :  { %v400_v43 = vmul.f32 %v1406_v42, %v389_v36 }
 0x4e2   :  { %v402_v44 = vsub.f32 %v385_v29, %v400_v43  ;;  %v476_v29 = vpack.c.bf16 %v469_v28, %v468_v27  ;;  %v1160_v43 = vld [vmem:[%s1718_s0 + $0x190] ss:$0 sm:$0xff] }
 0x4e4   :  { %v404_v45 = vmul.f32 %v402_v44, %v402_v44  ;;  %491 = vmatpush.bf16.msrb.mxu2 %v476_v29 }
 0x4e6   :  { %v406_v37 = vsel %vm65_vm6, %v404_v45, 0.0 }
 0x4e7   :  { %407 = vadd.xlane.f32.xlu0 %v406_v37  ;;  %v392_v46 = vpop.xlane.xlu2 %391 }
 0x4e8   :  { %v401_v47 = vmul.f32 %v1406_v42, %v392_v46 }
 0x4ea   :  { %v403_v48 = vsub.f32 %v386_v32, %v401_v47  ;;  %v475_v32 = vpack.c.bf16 %v467_v31, %v466_v30 }
 0x4ec   :  { %v405_v49 = vmul.f32 %v403_v48, %v403_v48  ;;  %492 = vmatpush.bf16.msrb.mxu2 %v475_v32 }
 0x4ee   :  { %v409_v50 = vsel %vm65_vm6, %v405_v49, 0.0 }
 0x4ef   :  { %410 = vadd.xlane.f32.xlu1 %v409_v50 }
 0x55a   :  { %v408_v60 = vpop.xlane.xlu0 %407 }
 0x55b   :  { %v412_v62 = vmul.f32 %v408_v60, %v1406_v42 }
 0x55d   :  { %v414_v63 = vadd.f32 1e-05, %v412_v62 }
 0x55f   :  { %1179 = vrsqrt.f32 %v414_v63  ;;  %vm422_vm8 = vweird.f32 %v414_v63 }
 0x562   :  { %v411_v0 = vpop.xlane.xlu1 %410 }
 0x563   :  { %v413_v1 = vmul.f32 %v411_v0, %v1406_v42 }
 0x565   :  { %v1180_v2 = vpop.eup %1179  ;;  %v415_v3 = vadd.f32 1e-05, %v413_v1  ;;  %v547_v1 = vld [vmem:[%s1718_s0 + $0x1a8] sm:$0xff] }
 0x566   :  { %v417_v4 = vmul.f32 %v1180_v2, %v414_v63  ;;  %vm423_vm7 = vweird.f32 %v1180_v2 }
 0x567   :  { %1181 = vrsqrt.f32 %v415_v3  ;;  %vm424_vm10 = vmor %vm422_vm8, %vm423_vm7  ;;  %vm432_vm11 = vweird.f32 %v415_v3 }
 0x568   :  { %v418_v5 = vmul.f32 %v1180_v2, %v417_v4 }
 0x56a   :  { %v419_v6 = vmul.f32 0.5, %v418_v5  ;;  %v572_v5 = vld [vmem:[%s1718_s0 + $0x1d0] sm:$0xff] }
 0x56c   :  { %v420_v8 = vsub.f32 1.5, %v419_v6  ;;  %v591_v6 = vld [vmem:[%s1718_s0 + $0x1e8] sm:$0xff] }
 0x56d   :  { %v1182_v7 = vpop.eup %1181 }
 0x56e   :  { %v427_v9 = vmul.f32 %v1182_v7, %v415_v3  ;;  %v421_v11 = vmul.f32 %v1180_v2, %v420_v8  ;;  %vm433_vm9 = vweird.f32 %v1182_v7  ;;  %v571_v3 = vld [vmem:[%s1718_s0 + $0x1c8] sm:$0xff] }
 0x56f   :  { %vm434_vm12 = vmor %vm432_vm11, %vm433_vm9  ;;  %v574_v8 = vpack.c.bf16 %v572_v5, %v571_v3 }
 0x570   :  { %v428_v10 = vmul.f32 %v1182_v7, %v427_v9  ;;  %v425_v14 = vsel %vm424_vm10, %v1180_v2, %v421_v11  ;;  %v548_v2 = vld [vmem:[%s1718_s0 + $0x1b0] sm:$0xff]  ;;  %v546_v11 = vld [vmem:[%s1718_s0 + $0x1a0] sm:$0xff] }
 0x571   :  { %v436_v18 = vmul.f32 %v425_v14, %v402_v44  ;;  %v551_v4 = vpack.c.bf16 %v548_v2, %v547_v1  ;;  %581 = vmatpush.bf16.msrb.mxu3 %v574_v8  ;;  %v570_v14 = vld [vmem:[%s1718_s0 + $0x1c0] sm:$0xff] }
 0x572   :  { %v429_v12 = vmul.f32 0.5, %v428_v10  ;;  %v545_v10 = vld [vmem:[%s1718_s0 + $0x198] sm:$0xff] }
 0x573   :  { %561 = vmatpush.bf16.msrb.mxu1 %v551_v4 }
 0x574   :  { %v430_v13 = vsub.f32 1.5, %v429_v12  ;;  %v569_v12 = vld [vmem:[%s1718_s0 + $0x1b8] sm:$0xff] }
 0x576   :  { %v431_v15 = vmul.f32 %v1182_v7, %v430_v13  ;;  %v550_v13 = vpack.c.bf16 %v546_v11, %v545_v10 }
 0x578   :  { %v435_v16 = vsel %vm434_vm12, %v1182_v7, %v431_v15  ;;  %v592_v7 = vld [vmem:[%s1718_s0 + $0x1f0] sm:$0xff]  ;;  %v589_v15 = vld [vmem:[%s1718_s0 + $0x1d8] sm:$0xff]  ;;  %562 = vmatpush.bf16.msrb.mxu1 %v550_v13 }
 0x579   :  { %v437_v19 = vmul.f32 %v435_v16, %v403_v48  ;;  %v594_v9 = vpack.c.bf16 %v592_v7, %v591_v6  ;;  %v590_v16 = vld [vmem:[%s1718_s0 + $0x1e0] sm:$0xff] }
 0x57b   :  { %v442_v20 = vpack.c.bf16 %v437_v19, %v436_v18  ;;  %601 = vmatpush.bf16.msra.mxu0 %v594_v9 }
 0x57d   :  { %1128 = vmatmul.msk.bf16.vlgmr.msrb.gmra.mxu0 %vm65_vm6, %v442_v20  ;;  %v593_v20 = vpack.c.bf16 %v590_v16, %v589_v15 }
 0x57f   :  { %602 = vmatpush.bf16.msra.mxu0 %v593_v20 }
 0x5fa   :  { %v459_v33 = vpop.f32.mrf.mxu0 }
 0x5fb   :  { %v460_v35 = vadd.f32 %v1159_v34, %v459_v33 }
 0x5fd   :  { %v464_v40 = vmax.f32 %v460_v35, 0.0 }
 0x602   :  { %v461_v38 = vpop.f32.mrf.mxu0 }
 0x603   :  { %v462_v39 = vadd.f32 %v1159_v34, %v461_v38 }
 0x605   :  { %v465_v41 = vmax.f32 %v462_v39, 0.0 }
 0x607   :  { %v474_v36 = vpack.c.bf16 %v465_v41, %v464_v40 }
 0x609   :  { %1129 = vmatmul.msk.bf16.vlgmr.msrb.gmra.mxu2 %vm481_vm13, %v474_v36 }
 0x68c   :  { %v494_v44 = vpop.f32.mrf.mxu2 }
 0x68d   :  { %v495_v45 = vadd.f32 %v1160_v43, %v494_v44 }
 0x68f   :  { %v499_v37 = vadd.f32 %v495_v45, %v436_v18 }
 0x691   :  { %v501_v46 = vsel %vm65_vm6, %v499_v37, 0.0 }
 0x692   :  { %502 = vadd.xlane.f32.xlu2 %v501_v46 }
 0x694   :  { %v496_v47 = vpop.f32.mrf.mxu2 }
 0x695   :  { %v497_v48 = vadd.f32 %v1160_v43, %v496_v47 }
 0x697   :  { %v500_v49 = vadd.f32 %v497_v48, %v437_v19  ;;  %v573_v19 = vpack.c.bf16 %v570_v14, %v569_v12 }
 0x699   :  { %v504_v50 = vsel %vm65_vm6, %v500_v49, 0.0  ;;  %582 = vmatpush.bf16.msrb.mxu3 %v573_v19  ;;  %v679_v19 = vld [vmem:[%s1718_s0 + $0x210] sm:$0xff] }
 0x69a   :  { %505 = vadd.xlane.f32.xlu0 %v504_v50 }
 0x705   :  { %v503_v53 = vpop.xlane.xlu2 %502 }
 0x706   :  { %v507_v54 = vmul.f32 %v503_v53, %v1406_v42 }
 0x708   :  { %v1461_v55 = vsub.f32 %v499_v37, %v507_v54 }
 0x70a   :  { %v511_v57 = vmul.f32 %v1461_v55, %v1461_v55 }
 0x70c   :  { %v513_v58 = vsel %vm65_vm6, %v511_v57, 0.0 }
 0x70d   :  { %v506_v59 = vpop.xlane.xlu0 %505  ;;  %514 = vadd.xlane.f32.xlu1 %v513_v58 }
 0x70e   :  { %v508_v60 = vmul.f32 %v506_v59, %v1406_v42 }
 0x710   :  { %v510_v62 = vsub.f32 %v500_v49, %v508_v60 }
 0x712   :  { %v512_v63 = vmul.f32 %v510_v62, %v510_v62 }
 0x714   :  { %v516_v0 = vsel %vm65_vm6, %v512_v63, 0.0 }
 0x715   :  { %517 = vadd.xlane.f32.xlu2 %v516_v0 }
 0x780   :  { %v515_v18 = vpop.xlane.xlu1 %514 }
 0x781   :  { %v519_v21 = vmul.f32 %v515_v18, %v1406_v42  ;;  %v678_v18 = vld [vmem:[%s1718_s0 + $0x208] sm:$0xff] }
 0x782   :  { %v682_v20 = vpack.c.bf16 %v679_v19, %v678_v18  ;;  %v776_v18 = vld [vmem:[%s1718_s0 + $0x250] sm:$0xff]  ;;  %v777_v19 = vld [vmem:[%s1718_s0 + $0x258] sm:$0xff] }
 0x783   :  { %v521_v22 = vadd.f32 1e-05, %v519_v21  ;;  %v676_v21 = vld [vmem:[%s1718_s0 + $0x1f8] sm:$0xff] }
 0x784   :  { %692 = vmatpush.bf16.msra.mxu3 %v682_v20  ;;  %v784_v20 = vpack.c.bf16 %v777_v19, %v776_v18  ;;  %v886_v19 = vld [vmem:[%s1718_s0 + $0x2c0] sm:$0xff] }
 0x785   :  { %1183 = vrsqrt.f32 %v521_v22  ;;  %vm529_vm15 = vweird.f32 %v521_v22 }
 0x788   :  { %v518_v23 = vpop.xlane.xlu2 %517 }
 0x789   :  { %v520_v24 = vmul.f32 %v518_v23, %v1406_v42 }
 0x78b   :  { %v1184_v25 = vpop.eup %1183  ;;  %v522_v26 = vadd.f32 1e-05, %v520_v24 }
 0x78c   :  { %v524_v27 = vmul.f32 %v1184_v25, %v521_v22  ;;  %vm530_vm14 = vweird.f32 %v1184_v25  ;;  %v677_v22 = vld [vmem:[%s1718_s0 + $0x200] sm:$0xff] }
 0x78d   :  { %1185 = vrsqrt.f32 %v522_v26  ;;  %vm531_vm1 = vmor %vm529_vm15, %vm530_vm14  ;;  %vm539_vm3 = vweird.f32 %v522_v26  ;;  %v681_v23 = vpack.c.bf16 %v677_v22, %v676_v21  ;;  %v774_v21 = vld [vmem:[%s1718_s0 + $0x240] sm:$0xff]  ;;  %v775_v22 = vld [vmem:[%s1718_s0 + $0x248] sm:$0xff] }
 0x78e   :  { %v525_v28 = vmul.f32 %v1184_v25, %v524_v27 }
 0x78f   :  { %693 = vmatpush.bf16.msra.mxu3 %v681_v23  ;;  %v783_v23 = vpack.c.bf16 %v775_v22, %v774_v21  ;;  %v884_v22 = vld [vmem:[%s1718_s0 + $0x2b0] sm:$0xff] }
 0x790   :  { %v526_v29 = vmul.f32 0.5, %v525_v28 }
 0x792   :  { %v527_v31 = vsub.f32 1.5, %v526_v29 }
 0x793   :  { %v1186_v30 = vpop.eup %1185 }
 0x794   :  { %v534_v32 = vmul.f32 %v1186_v30, %v522_v26  ;;  %v528_v34 = vmul.f32 %v1184_v25, %v527_v31  ;;  %vm540_vm0 = vweird.f32 %v1186_v30 }
 0x795   :  { %vm541_vm4 = vmor %vm539_vm3, %vm540_vm0 }
 0x796   :  { %v535_v33 = vmul.f32 %v1186_v30, %v534_v32  ;;  %v532_v39 = vsel %vm531_vm1, %v1184_v25, %v528_v34 }
 0x797   :  { %v1507_v36 = vmul.f32 %v532_v39, %v1461_v55 }
 0x798   :  { %v536_v35 = vmul.f32 0.5, %v535_v33 }
 0x79a   :  { %v537_v38 = vsub.f32 1.5, %v536_v35 }
 0x79c   :  { %v538_v40 = vmul.f32 %v1186_v30, %v537_v38 }
 0x79e   :  { %v542_v41 = vsel %vm541_vm4, %v1186_v30, %v538_v40 }
 0x79f   :  { %v1509_v43 = vmul.f32 %v542_v41, %v510_v62 }
 0x7a1   :  { %v549_v44 = vpack.c.bf16 %v1509_v43, %v1507_v36 }
 0x7a3   :  { %1130 = vmatmul.msk.bf16.vlgmr.msrb.gmra.mxu1 %vm65_vm6, %v549_v44  ;;  %1131 = vmatmul.msk.bf16.vlgmr.msrb.gmra.mxu3 %vm65_vm6, %v549_v44 }
 0x7a4   :  { %1132 = vmatmul.msk.bf16.vlgmr.msra.gmra.mxu0 %vm65_vm6, %v549_v44 }
 0x820   :  { %v564_v47 = vpop.f32.mrf.mxu1 }
 0x821   :  { %v604_v45 = vpop.f32.mrf.mxu0 }
 0x826   :  { %v584_v37 = vpop.f32.mrf.mxu3 }
 0x828   :  { %v566_v54 = vpop.f32.mrf.mxu1 }
 0x829   :  { %v606_v46 = vpop.f32.mrf.mxu0  ;;  %v609_v55 = vpack.c.bf16 %v566_v54, %v564_v47  ;;  %v746_v47 = vld [vmem:[%s1718_s0 + $0x218] sm:$0xff] }
 0x82a   :  { %v658_v48 = vpack.c.bf16 %v606_v46, %v604_v45 }
 0x82c   :  { %669 = vmatpush.bf16.msra.mxu1 %v658_v48  ;;  %v747_v48 = vld [vmem:[%s1718_s0 + $0x220] sm:$0xff] }
 0x82e   :  { %v586_v49 = vpop.f32.mrf.mxu3 }
 0x82f   :  { %v610_v50 = vpack.c.bf16 %v586_v49, %v584_v37  ;;  %v749_v37 = vld [vmem:[%s1718_s0 + $0x230] sm:$0xff]  ;;  %v751_v49 = vpack.c.bf16 %v747_v48, %v746_v47 }
 0x831   :  { %v615_v53 = vsel %vm65_vm6, %v610_v50, 0 }
 0x832   :  { %624 = vmatpush.bf16.xpose.msra.mxu2 %v615_v53 }
 0x839   :  { %1133 = vmatmul.msk.bf16.vlgmr.msra.gmra.mxu2 %vm65_vm6, %v609_v55 }
 0x8bc   :  { %v626_v57 = vpop.f32.mrf.mxu2 }
 0x8bd   :  { %v631_v58 = vmul.f32 0.17677669, %v626_v57 }
 0x8bf   :  { %v633_v59 = vadd.f32 %v631_v58, %v1377_v56 }
 0x8c1   :  { %v635_v60 = vsel %vm319_vm2, %v633_v59, -inf }
 0x8c2   :  { %636 = vmax.xlane.f32.xlu0 %v635_v60 }
 0x8c4   :  { %v628_v62 = vpop.f32.mrf.mxu2 }
 0x8c5   :  { %v632_v63 = vmul.f32 0.17677669, %v628_v62 }
 0x8c7   :  { %v634_v0 = vadd.f32 %v632_v63, %v1382_v61 }
 0x8c9   :  { %v638_v1 = vsel %vm319_vm2, %v634_v0, -inf }
 0x8ca   :  { %639 = vmax.xlane.f32.xlu1 %v638_v1 }
 0x935   :  { %v637_v2 = vpop.xlane.xlu0 %636 }
 0x936   :  { %v641_v3 = vsub.f32 %v633_v59, %v637_v2 }
 0x938   :  { %v643_v4 = vmul.f32 1.442695, %v641_v3 }
 0x93a   :  { %1187 = vpow2.f32 %v643_v4 }
 0x93d   :  { %v640_v5 = vpop.xlane.xlu1 %639 }
 0x93e   :  { %v642_v6 = vsub.f32 %v634_v0, %v640_v5 }
 0x940   :  { %v1188_v7 = vpop.eup %1187  ;;  %v645_v8 = vmul.f32 1.442695, %v642_v6 }
 0x941   :  { %v647_v56 = vsel %vm319_vm2, %v1188_v7, 0.0 }
 0x942   :  { %1189 = vpow2.f32 %v645_v8  ;;  %648 = vadd.xlane.f32.xlu2 %v647_v56 }
 0x948   :  { %v1190_v9 = vpop.eup %1189 }
 0x949   :  { %v650_v10 = vsel %vm319_vm2, %v1190_v9, 0.0 }
 0x94a   :  { %651 = vadd.xlane.f32.xlu0 %v650_v10 }
 0x9b5   :  { %v649_v61 = vpop.xlane.xlu2 %648 }
 0x9b6   :  { %1191 = vrcp.f32 %v649_v61 }
 0x9bc   :  { %v1192_v12 = vpop.eup %1191 }
 0x9bd   :  { %v652_v11 = vpop.xlane.xlu0 %651  ;;  %v655_v14 = vmul.f32 %v1192_v12, %v1188_v7  ;;  %v781_v12 = vld [vmem:[%s1718_s0 + $0x278] sm:$0xff] }
 0x9be   :  { %1193 = vrcp.f32 %v652_v11  ;;  %v780_v11 = vld [vmem:[%s1718_s0 + $0x270] sm:$0xff] }
 0x9c4   :  { %v1194_v13 = vpop.eup %1193 }
 0x9c5   :  { %v656_v15 = vmul.f32 %v1194_v13, %v1190_v9  ;;  %v786_v13 = vpack.c.bf16 %v781_v12, %v780_v11 }
 0x9c7   :  { %v657_v16 = vpack.c.bf16 %v656_v15, %v655_v14  ;;  %796 = vmatpush.bf16.msrb.mxu2 %v786_v13  ;;  %v778_v14 = vld [vmem:[%s1718_s0 + $0x260] sm:$0xff]  ;;  %v779_v15 = vld [vmem:[%s1718_s0 + $0x268] sm:$0xff] }
 0x9c9   :  { %1134 = vmatmul.msk.bf16.vlgmr.msra.gmra.mxu1 %vm319_vm2, %v657_v16  ;;  %v785_v16 = vpack.c.bf16 %v779_v15, %v778_v14 }
 0x9cb   :  { %797 = vmatpush.bf16.msrb.mxu2 %v785_v16 }
 0x9cf   :  { %798 = vmatpush.bf16.msrb.mxu2 %v784_v20  ;;  %v887_v20 = vld [vmem:[%s1718_s0 + $0x2c8] sm:$0xff] }
 0x9d0   :  { %v890_v21 = vpack.c.bf16 %v887_v20, %v886_v19 }
 0x9d2   :  { %902 = vmatpush.bf16.msrb.mxu3 %v890_v21 }
 0x9d3   :  { %799 = vmatpush.bf16.msrb.mxu2 %v783_v23  ;;  %v885_v23 = vld [vmem:[%s1718_s0 + $0x2b8] sm:$0xff] }
 0xa46   :  { %v671_v24 = vpop.f32.mrf.mxu1 }
 0xa4e   :  { %v673_v25 = vpop.f32.mrf.mxu1 }
 0xa4f   :  { %v680_v26 = vpack.c.bf16 %v673_v25, %v671_v24  ;;  %v1161_v25 = vld [vmem:[%s1718_s0 + $0x238] ss:$0 sm:$0xff] }
 0xa51   :  { %1135 = vmatmul.msk.bf16.vlgmr.msra.gmra.mxu3 %vm65_vm6, %v680_v26 }
 0xad4   :  { %v695_v27 = vpop.f32.mrf.mxu3 }
 0xad5   :  { %v700_v28 = vadd.f32 %v695_v27, %v1507_v36 }
 0xad7   :  { %v702_v29 = vsel %vm65_vm6, %v700_v28, 0.0 }
 0xad8   :  { %703 = vadd.xlane.f32.xlu1 %v702_v29 }
 0xadc   :  { %v697_v30 = vpop.f32.mrf.mxu3 }
 0xadd   :  { %v701_v31 = vadd.f32 %v697_v30, %v1509_v43  ;;  %v748_v43 = vld [vmem:[%s1718_s0 + $0x228] sm:$0xff] }
 0xade   :  { %v752_v46 = vpack.c.bf16 %v749_v37, %v748_v43 }
 0xadf   :  { %v705_v32 = vsel %vm65_vm6, %v701_v31, 0.0 }
 0xae0   :  { %706 = vadd.xlane.f32.xlu2 %v705_v32  ;;  %764 = vmatpush.bf16.msrb.mxu0 %v752_v46  ;;  %v1162_v32 = vld [vmem:[%s1718_s0 + $0x280] ss:$0 sm:$0xff] }
 0xae4   :  { %765 = vmatpush.bf16.msrb.mxu0 %v751_v49 }
 0xb4b   :  { %v704_v33 = vpop.xlane.xlu1 %703 }
 0xb4c   :  { %v708_v34 = vmul.f32 %v704_v33, %v1406_v42 }
 0xb4e   :  { %v710_v35 = vsub.f32 %v700_v28, %v708_v34 }
 0xb50   :  { %v712_v38 = vmul.f32 %v710_v35, %v710_v35 }
 0xb52   :  { %v714_v39 = vsel %vm65_vm6, %v712_v38, 0.0 }
 0xb53   :  { %715 = vadd.xlane.f32.xlu0 %v714_v39  ;;  %v707_v40 = vpop.xlane.xlu2 %706 }
 0xb54   :  { %v709_v41 = vmul.f32 %v707_v40, %v1406_v42 }
 0xb56   :  { %v711_v36 = vsub.f32 %v701_v31, %v709_v41 }
 0xb58   :  { %v713_v44 = vmul.f32 %v711_v36, %v711_v36 }
 0xb5a   :  { %v717_v45 = vsel %vm65_vm6, %v713_v44, 0.0 }
 0xb5b   :  { %718 = vadd.xlane.f32.xlu1 %v717_v45 }
 0xbc6   :  { %v716_v50 = vpop.xlane.xlu0 %715 }
 0xbc7   :  { %v720_v53 = vmul.f32 %v716_v50, %v1406_v42 }
 0xbc9   :  { %v722_v54 = vadd.f32 1e-05, %v720_v53 }
 0xbcb   :  { %1195 = vrsqrt.f32 %v722_v54  ;;  %vm730_vm7 = vweird.f32 %v722_v54 }
 0xbce   :  { %v719_v55 = vpop.xlane.xlu1 %718 }
 0xbcf   :  { %v721_v57 = vmul.f32 %v719_v55, %v1406_v42  ;;  %v855_v55 = vld [vmem:[%s1718_s0 + $0x2a0] sm:$0xff] }
 0xbd1   :  { %v1196_v58 = vpop.eup %1195  ;;  %v723_v59 = vadd.f32 1e-05, %v721_v57 }
 0xbd2   :  { %v725_v60 = vmul.f32 %v1196_v58, %v722_v54  ;;  %vm731_vm5 = vweird.f32 %v1196_v58  ;;  %v854_v54 = vld [vmem:[%s1718_s0 + $0x298] sm:$0xff] }
 0xbd3   :  { %1197 = vrsqrt.f32 %v723_v59  ;;  %vm732_vm9 = vmor %vm730_vm7, %vm731_vm5  ;;  %vm740_vm10 = vweird.f32 %v723_v59  ;;  %v858_v57 = vpack.c.bf16 %v855_v55, %v854_v54  ;;  %vm922_vm5 = vcmp.eq.s32.totalorder %v1343_v17, %v1368_v51 }
 0xbd4   :  { %v726_v62 = vmul.f32 %v1196_v58, %v725_v60  ;;  %vm944_vm7 = vcmask 123904  }
 0xbd5   :  { %870 = vmatpush.bf16.msrb.mxu1 %v858_v57 }
 0xbd6   :  { %v727_v63 = vmul.f32 0.5, %v726_v62 }
 0xbd8   :  { %v728_v1 = vsub.f32 1.5, %v727_v63 }
 0xbd9   :  { %v1198_v0 = vpop.eup %1197 }
 0xbda   :  { %v735_v2 = vmul.f32 %v1198_v0, %v723_v59  ;;  %v729_v4 = vmul.f32 %v1196_v58, %v728_v1  ;;  %vm741_vm8 = vweird.f32 %v1198_v0  ;;  %v853_v59 = vld [vmem:[%s1718_s0 + $0x290] sm:$0xff] }
 0xbdb   :  { %vm742_vm11 = vmor %vm740_vm10, %vm741_vm8 }
 0xbdc   :  { %v736_v3 = vmul.f32 %v1198_v0, %v735_v2  ;;  %v733_v7 = vsel %vm732_vm9, %v1196_v58, %v729_v4  ;;  %v852_v58 = vld [vmem:[%s1718_s0 + $0x288] sm:$0xff] }
 0xbdd   :  { %v744_v9 = vmul.f32 %v733_v7, %v710_v35  ;;  %v857_v60 = vpack.c.bf16 %v853_v59, %v852_v58 }
 0xbde   :  { %v737_v5 = vmul.f32 0.5, %v736_v3 }
 0xbdf   :  { %871 = vmatpush.bf16.msrb.mxu1 %v857_v60 }
 0xbe0   :  { %v738_v6 = vsub.f32 1.5, %v737_v5 }
 0xbe2   :  { %v739_v8 = vmul.f32 %v1198_v0, %v738_v6 }
 0xbe4   :  { %v743_v56 = vsel %vm742_vm11, %v1198_v0, %v739_v8 }
 0xbe5   :  { %v745_v10 = vmul.f32 %v743_v56, %v711_v36 }
 0xbe7   :  { %v750_v61 = vpack.c.bf16 %v745_v10, %v744_v9 }
 0xbe9   :  { %1136 = vmatmul.msk.bf16.vlgmr.msrb.gmra.mxu0 %vm65_vm6, %v750_v61 }
 0xc66   :  { %v767_v24 = vpop.f32.mrf.mxu0 }
 0xc67   :  { %v768_v26 = vadd.f32 %v1161_v25, %v767_v24  ;;  %v889_v24 = vpack.c.bf16 %v885_v23, %v884_v22 }
 0xc69   :  { %v772_v29 = vmax.f32 %v768_v26, 0.0  ;;  %903 = vmatpush.bf16.msrb.mxu3 %v889_v24  ;;  %v21_v26 = vld [vmem:[%s1721_s2 + $0x8] sm:$0xff]  ;;  %v981_v24 = vld [vmem:[%s1718_s0 + $0x310] sm:$0xff] }
 0xc6e   :  { %v769_v27 = vpop.f32.mrf.mxu0 }
 0xc6f   :  { %v770_v28 = vadd.f32 %v1161_v25, %v769_v27  ;;  %v20_v25 = vld [vmem:[%s1721_s2] sm:$0xff]  ;;  %v1215_v27 = vmov 0  }
 0xc70   :  { %1150 = vset.pattern.permute.xlu0 %v1215_v27  ;;  %1151 = vset.pattern.permute.xlu1 %v1215_v27  ;;  %v979_v27 = vld [vmem:[%s1718_s0 + $0x300] sm:$0xff] }
 0xc71   :  { %v773_v30 = vmax.f32 %v770_v28, 0.0 }
 0xc73   :  { %v782_v31 = vpack.c.bf16 %v773_v30, %v772_v29  ;;  %v1163_v29 = vld [vmem:[%s1718_s0 + $0x2a8] ss:$0 sm:$0xff] }
 0xc75   :  { %1137 = vmatmul.msk.bf16.vlgmr.msrb.gmra.mxu2 %vm481_vm13, %v782_v31 }
 0xcf8   :  { %v801_v33 = vpop.f32.mrf.mxu2 }
 0xcf9   :  { %v802_v34 = vadd.f32 %v1162_v32, %v801_v33 }
 0xcfb   :  { %v806_v35 = vadd.f32 %v802_v34, %v744_v9 }
 0xcfd   :  { %v808_v38 = vsel %vm65_vm6, %v806_v35, 0.0 }
 0xcfe   :  { %809 = vadd.xlane.f32.xlu2 %v808_v38 }
 0xd00   :  { %v803_v39 = vpop.f32.mrf.mxu2 }
 0xd01   :  { %v804_v40 = vadd.f32 %v1162_v32, %v803_v39 }
 0xd03   :  { %v807_v41 = vadd.f32 %v804_v40, %v745_v10  ;;  %v1006_v40 = vld [vmem:[%s1718_s0 + $0x338] sm:$0xff] }
 0xd05   :  { %v811_v36 = vsel %vm65_vm6, %v807_v41, 0.0 }
 0xd06   :  { %812 = vadd.xlane.f32.xlu0 %v811_v36 }
 0xd1a   :  { %912 = vperm.xlu0 %1150, %v20_v25   ;;  %v982_v25 = vld [vmem:[%s1718_s0 + $0x318] sm:$0xff] }
 0xd71   :  { %v810_v44 = vpop.xlane.xlu2 %809 }
 0xd72   :  { %v814_v45 = vmul.f32 %v810_v44, %v1406_v42  ;;  %v1004_v44 = vld [vmem:[%s1718_s0 + $0x328] sm:$0xff] }
 0xd74   :  { %v816_v43 = vsub.f32 %v806_v35, %v814_v45  ;;  %v1005_v45 = vld [vmem:[%s1718_s0 + $0x330] sm:$0xff] }
 0xd76   :  { %v818_v37 = vmul.f32 %v816_v43, %v816_v43 }
 0xd78   :  { %v820_v46 = vsel %vm65_vm6, %v818_v37, 0.0  ;;  %v1216_v37 = vmov 0.0  }
 0xd79   :  { %v813_v47 = vpop.xlane.xlu0 %812  ;;  %821 = vadd.xlane.f32.xlu1 %v820_v46  ;;  %v1140_v46 = vsel %vm922_vm5, 1.0, %v1216_v37 }
 0xd7a   :  { %v815_v48 = vmul.f32 %v813_v47, %v1406_v42  ;;  %v943_v47 = vmul.f32 %v1373_v52, %v1140_v46  ;;  %v925_v60 = vpack.c.bf16 %v1140_v46, %v1140_v46  ;;  %v953_v52 = vld [vmem:[%s1718_s0 + $0x2e8] sm:$0xff] }
 0xd7c   :  { %v817_v49 = vsub.f32 %v807_v41, %v815_v48  ;;  %v1007_v41 = vld [vmem:[%s1718_s0 + $0x340] sm:$0xff]  ;;  %v945_v48 = vsel %vm944_vm7, %v943_v47, 0.0 }
 0xd7d   :  { %v1009_v36 = vpack.c.bf16 %v1007_v41, %v1006_v40  ;;  %v1167_v40 = vld [vmem:[%s1718_s0 + $0x370] ss:$0 sm:$0xff] }
 0xd7e   :  { %v819_v50 = vmul.f32 %v817_v49, %v817_v49 }
 0xd7f   :  { %1021 = vmatpush.bf16.msra.mxu3 %v1009_v36 }
 0xd80   :  { %v823_v53 = vsel %vm65_vm6, %v819_v50, 0.0  ;;  %v1164_v50 = vld [vmem:[%s1718_s0 + $0x2d0] ss:$0 sm:$0xff] }
 0xd81   :  { %824 = vadd.xlane.f32.xlu2 %v823_v53 }
 0xd89   :  { %946 = vadd.xlane.f32.xlu2 %v945_v48 }
 0xd8c   :  { %v913_v54 = vpop.permute.xlu0 %912 }
 0xd92   :  { %917 = vperm.xlu1 %1151, %v21_v26   ;;  %v985_v26 = vpack.c.bf16 %v982_v25, %v981_v24 }
 0xd94   :  { %997 = vmatpush.bf16.msra.mxu1 %v985_v26 }
 0xdec   :  { %v822_v62 = vpop.xlane.xlu1 %821 }
 0xded   :  { %v826_v63 = vmul.f32 %v822_v62, %v1406_v42  ;;  %v954_v62 = vld [vmem:[%s1718_s0 + $0x2f0] sm:$0xff] }
 0xdef   :  { %v828_v0 = vadd.f32 1e-05, %v826_v63  ;;  %v957_v63 = vpack.c.bf16 %v954_v62, %v953_v52 }
 0xdf1   :  { %1199 = vrsqrt.f32 %v828_v0  ;;  %vm836_vm13 = vweird.f32 %v828_v0  ;;  %969 = vmatpush.bf16.msra.mxu2 %v957_v63 }
 0xdf4   :  { %v825_v1 = vpop.xlane.xlu2 %824 }
 0xdf5   :  { %v827_v2 = vmul.f32 %v825_v1, %v1406_v42  ;;  %v952_v1 = vld [vmem:[%s1718_s0 + $0x2e0] sm:$0xff] }
 0xdf7   :  { %v1200_v3 = vpop.eup %1199  ;;  %v829_v4 = vadd.f32 1e-05, %v827_v2 }
 0xdf8   :  { %v831_v5 = vmul.f32 %v1200_v3, %v828_v0  ;;  %vm837_vm12 = vweird.f32 %v1200_v3  ;;  %v951_v0 = vld [vmem:[%s1718_s0 + $0x2d8] sm:$0xff] }
 0xdf9   :  { %1201 = vrsqrt.f32 %v829_v4  ;;  %vm838_vm15 = vmor %vm836_vm13, %vm837_vm12  ;;  %vm846_vm0 = vweird.f32 %v829_v4  ;;  %v956_v2 = vpack.c.bf16 %v952_v1, %v951_v0 }
 0xdfa   :  { %v832_v6 = vmul.f32 %v1200_v3, %v831_v5 }
 0xdfb   :  { %970 = vmatpush.bf16.msra.mxu2 %v956_v2 }
 0xdfc   :  { %v833_v7 = vmul.f32 0.5, %v832_v6  ;;  %v1035_v6 = vld [vmem:[%s1718_s0 + $0x350] sm:$0xff] }
 0xdfe   :  { %v834_v56 = vsub.f32 1.5, %v833_v7  ;;  %v1036_v7 = vld [vmem:[%s1718_s0 + $0x358] sm:$0xff] }
 0xdff   :  { %v1202_v8 = vpop.eup %1201 }
 0xe00   :  { %v841_v9 = vmul.f32 %v1202_v8, %v829_v4  ;;  %v835_v61 = vmul.f32 %v1200_v3, %v834_v56  ;;  %vm847_vm14 = vweird.f32 %v1202_v8  ;;  %v1038_v4 = vld [vmem:[%s1718_s0 + $0x368] sm:$0xff]  ;;  %v947_v56 = vpop.xlane.xlu2 %946 }
 0xe01   :  { %vm848_vm1 = vmor %vm846_vm0, %vm847_vm14 }
 0xe02   :  { %v842_v10 = vmul.f32 %v1202_v8, %v841_v9  ;;  %v839_v13 = vsel %vm838_vm15, %v1200_v3, %v835_v61  ;;  %v1037_v3 = vld [vmem:[%s1718_s0 + $0x360] sm:$0xff]  ;;  %v948_v9 = vadd.f32 0.0001, %v947_v56 }
 0xe03   :  { %v850_v15 = vmul.f32 %v839_v13, %v816_v43  ;;  %v1008_v43 = vpack.c.bf16 %v1005_v45, %v1004_v44  ;;  %v1041_v5 = vpack.c.bf16 %v1038_v4, %v1037_v3 }
 0xe04   :  { %v843_v11 = vmul.f32 0.5, %v842_v10  ;;  %v918_v57 = vpop.permute.xlu1 %917  ;;  %1203 = vrcp.f32 %v948_v9 }
 0xe05   :  { %1022 = vmatpush.bf16.msra.mxu3 %v1008_v43 }
 0xe06   :  { %v844_v12 = vsub.f32 1.5, %v843_v11 }
 0xe08   :  { %v845_v14 = vmul.f32 %v1202_v8, %v844_v12 }
 0xe0a   :  { %v849_v42 = vsel %vm848_vm1, %v1202_v8, %v845_v14  ;;  %v1040_v8 = vpack.c.bf16 %v1036_v7, %v1035_v6  ;;  %v1204_v10 = vpop.eup %1203  ;;  %v1165_v14 = vld [vmem:[%s1718_s0 + $0x348] ss:$0 sm:$0xff] }
 0xe0b   :  { %v851_v16 = vmul.f32 %v849_v42, %v817_v49 }
 0xe0d   :  { %v856_v18 = vpack.c.bf16 %v851_v16, %v850_v15 }
 0xe0f   :  { %1138 = vmatmul.msk.bf16.vlgmr.msrb.gmra.mxu1 %vm65_vm6, %v856_v18 }
 0xe8c   :  { %v873_v28 = vpop.f32.mrf.mxu1 }
 0xe8d   :  { %v874_v30 = vadd.f32 %v1163_v29, %v873_v28  ;;  %v980_v28 = vld [vmem:[%s1718_s0 + $0x308] sm:$0xff] }
 0xe8f   :  { %v880_v32 = vmul.f32 0.01, %v874_v30  ;;  %vm878_vm3 = vcmp.ge.f32.partialorder %v874_v30, 0.0 }
 0xe91   :  { %v882_v35 = vsel %vm878_vm3, %v874_v30, %v880_v32  ;;  %v1166_v30 = vld [vmem:[%s1718_s0 + $0x2f8] ss:$0 sm:$0xff] }
 0xe94   :  { %v875_v31 = vpop.f32.mrf.mxu1 }
 0xe95   :  { %v876_v33 = vadd.f32 %v1163_v29, %v875_v31  ;;  %v984_v29 = vpack.c.bf16 %v980_v28, %v979_v27 }
 0xe97   :  { %vm879_vm4 = vcmp.ge.f32.partialorder %v876_v33, 0.0  ;;  %v881_v34 = vmul.f32 0.01, %v876_v33  ;;  %998 = vmatpush.bf16.msra.mxu1 %v984_v29 }
 0xe99   :  { %v883_v38 = vsel %vm879_vm4, %v876_v33, %v881_v34 }
 0xe9a   :  { %v888_v39 = vpack.c.bf16 %v883_v38, %v882_v35 }
 0xe9c   :  { %1139 = vmatmul.msk.bf16.vlgmr.msrb.gmra.mxu3 %vm65_vm6, %v888_v39 }
 0xf1f   :  { %v905_v49 = vpop.f32.mrf.mxu3 }
 0xf20   :  { %v906_v53 = vadd.f32 %v1164_v50, %v905_v49 }
 0xf22   :  { %v920_v59 = vmul.f32 %v913_v54, %v906_v53  ;;  %v1168_v54 = vld [vmem:[%s1718_s0 + $0x320] ss:$0 sm:$0xff] }
 0xf27   :  { %v907_v55 = vpop.f32.mrf.mxu3 }
 0xf28   :  { %v908_v58 = vadd.f32 %v1164_v50, %v907_v55 }
 0xf2a   :  { %v921_v17 = vmul.f32 %v918_v57, %v908_v58 }
 0xf2c   :  { %v926_v51 = vpack.c.bf16 %v921_v17, %v920_v59 }
 0xf2e   :  { %937 = vmatpush.bf16.msra.mxu0 %v926_v51  ;;  %1144 = vmatmul.msk.bf16.vlgmr.msra.gmra.mxu3 %vm65_vm6, %v926_v51 }
 0xf31   :  { %1141 = vmatmul.msk.bf16.vlgmr.msra.gmra.mxu0 %vm319_vm2, %v925_v60 }
 0xf32   :  { %1053 = vmatpush.bf16.msrb.mxu0 %v1041_v5 }
 0xf36   :  { %1054 = vmatpush.bf16.msrb.mxu0 %v1040_v8 }
 0xfae   :  { %v939_v61 = vpop.f32.mrf.mxu0 }
 0xfaf   :  { %v950_v11 = vmul.f32 %v1204_v10, %v939_v61 }
 0xfb1   :  { %v955_v12 = vpack.c.bf16 %v950_v11, %v950_v11  ;;  %v1024_v13 = vpop.f32.mrf.mxu3 }
 0xfb2   :  { %v1025_v42 = vadd.f32 %v1165_v14, %v1024_v13 }
 0xfb3   :  { %1142 = vmatmul.msk.bf16.vlgmr.msra.gmra.mxu2 %vm65_vm6, %v955_v12 }
 0xfb4   :  { %v1031_v18 = vmul.f32 0.0, %v1025_v42  ;;  %vm1029_vm8 = vcmp.ge.f32.partialorder %v1025_v42, 0.0 }
 0xfb6   :  { %v941_v15 = vpop.f32.mrf.mxu0  ;;  %v1033_v21 = vsel %vm1029_vm8, %v1025_v42, %v1031_v18 }
 0xfb9   :  { %v1026_v16 = vpop.f32.mrf.mxu3 }
 0xfba   :  { %v1027_v19 = vadd.f32 %v1165_v14, %v1026_v16 }
 0xfbc   :  { %vm1030_vm9 = vcmp.ge.f32.partialorder %v1027_v19, 0.0  ;;  %v1032_v20 = vmul.f32 0.0, %v1027_v19 }
 0xfbe   :  { %v1034_v22 = vsel %vm1030_vm9, %v1027_v19, %v1032_v20 }
 0xfbf   :  { %v1039_v23 = vpack.c.bf16 %v1034_v22, %v1033_v21 }
 0xfc1   :  { %1145 = vmatmul.msk.bf16.vlgmr.msrb.gmra.mxu0 %vm65_vm6, %v1039_v23 }
0x1036   :  { %v972_v31 = vpop.f32.mrf.mxu2 }
0x1037   :  { %v973_v32 = vadd.f32 %v1166_v30, %v972_v31 }
0x1039   :  { %vm976_vm10 = vcmp.ge.f32.partialorder %v973_v32, 0.0  ;;  %v977_v33 = vmul.f32 0.0, %v973_v32 }
0x103b   :  { %v978_v34 = vsel %vm976_vm10, %v973_v32, %v977_v33 }
0x103c   :  { %v983_v35 = vpack.c.bf16 %v978_v34, %v978_v34 }
0x103e   :  { %1143 = vmatmul.msk.bf16.vlgmr.msra.gmra.mxu1 %vm65_vm6, %v983_v35  ;;  %v974_v38 = vpop.f32.mrf.mxu2  ;;  %v1056_v39 = vpop.f32.mrf.mxu0  ;;  %vm1109_vm6 = vcmask 129028  }
0x103f   :  { %v1057_v41 = vadd.f32 %v1167_v40, %v1056_v39 }
0x1041   :  { %v1061_v44 = vsel %vm319_vm2, %v1057_v41, 0.0 }
0x1042   :  { %v1062_v43 = vrot.slane %v1061_v44, 4 }
0x1044   :  { %v1063_v46 = vadd.f32 %v1062_v43, %v1061_v44 }
0x1046   :  { %v1058_v36 = vpop.f32.mrf.mxu0  ;;  %v1064_v48 = vrot.slane %v1063_v46, 2 }
0x1047   :  { %v1059_v45 = vadd.f32 %v1167_v40, %v1058_v36 }
0x1048   :  { %v1065_v50 = vadd.f32 %v1064_v48, %v1063_v46 }
0x1049   :  { %v1068_v37 = vsel %vm319_vm2, %v1059_v45, 0.0 }
0x104a   :  { %v1069_v47 = vrot.slane %v1068_v37, 4  ;;  %v1066_v55 = vrot.slane %v1065_v50, 1 }
0x104c   :  { %v1070_v49 = vadd.f32 %v1069_v47, %v1068_v37  ;;  %v1067_v17 = vadd.f32 %v1066_v55, %v1065_v50 }
0x104e   :  { %v1071_v53 = vrot.slane %v1070_v49, 2  ;;  %v1075_v63 = vmul.f32 0.125, %v1067_v17 }
0x1050   :  { %v1072_v57 = vadd.f32 %v1071_v53, %v1070_v49 }
0x1052   :  { %v1073_v52 = vrot.slane %v1072_v57, 1 }
0x1054   :  { %v1074_v2 = vadd.f32 %v1073_v52, %v1072_v57 }
0x1056   :  { %v1076_v6 = vmul.f32 0.125, %v1074_v2 }
0x10bb   :  { %v1000_v58 = vpop.f32.mrf.mxu1 }
0x10bc   :  { %v1001_v59 = vadd.f32 %v1168_v54, %v1000_v58 }
0x10be   :  { %v1078_v51 = vrot.slane %v1001_v59, 1  ;;  %v1079_v60 = vperm.slane %v1001_v59, 0 }
0x10c0   :  { %v1080_v62 = vperm.slane %v1078_v51, 0  ;;  %v1083_v0 = vadd.f32 %v1079_v60, %v1057_v41 }
0x10c2   :  { %v1085_v1 = vsub.f32 %v1083_v0, %v1075_v63  ;;  %v1084_v5 = vadd.f32 %v1080_v62, %v1059_v45 }
0x10c3   :  { %v1002_v3 = vpop.f32.mrf.mxu1 }
0x10c4   :  { %v1087_v4 = vsel %vm319_vm2, %v1085_v1, -inf  ;;  %v1086_v7 = vsub.f32 %v1084_v5, %v1076_v6 }
0x10c5   :  { %1088 = vmax.xlane.f32.xlu2 %v1087_v4 }
0x10c6   :  { %v1090_v8 = vsel %vm319_vm2, %v1086_v7, -inf }
0x10cd   :  { %1091 = vmax.xlane.f32.xlu2 %v1090_v8 }
0x1138   :  { %v1089_v56 = vpop.xlane.xlu2 %1088 }
0x1139   :  { %v1093_v9 = vsub.f32 %v1085_v1, %v1089_v56 }
0x113b   :  { %v1095_v10 = vmul.f32 1.442695, %v1093_v9 }
0x113d   :  { %1205 = vpow2.f32 %v1095_v10 }
0x1140   :  { %v1092_v61 = vpop.xlane.xlu2 %1091 }
0x1141   :  { %v1094_v11 = vsub.f32 %v1086_v7, %v1092_v61 }
0x1143   :  { %v1206_v12 = vpop.eup %1205  ;;  %v1097_v13 = vmul.f32 1.442695, %v1094_v11 }
0x1144   :  { %v1099_v14 = vsel %vm319_vm2, %v1206_v12, 0.0 }
0x1145   :  { %1207 = vpow2.f32 %v1097_v13  ;;  %1100 = vadd.xlane.f32.xlu2 %v1099_v14 }
0x114b   :  { %v1208_v42 = vpop.eup %1207 }
0x114c   :  { %v1102_v15 = vsel %vm319_vm2, %v1208_v42, 0.0 }
0x114d   :  { %1103 = vadd.xlane.f32.xlu1 %v1102_v15 }
0x11b8   :  { %v1101_v16 = vpop.xlane.xlu2 %1100 }
0x11b9   :  { %1209 = vrcp.f32 %v1101_v16 }
0x11bf   :  { %v1210_v18 = vpop.eup %1209 }
0x11c0   :  { %v1107_v19 = vmul.f32 %v1210_v18, %v1206_v12  ;;  %v1104_v20 = vpop.xlane.xlu1 %1103 }
0x11c1   :  { %1211 = vrcp.f32 %v1104_v20 }
0x11c2   :  { %1110 = vst.msk [vmem:[%s1722_s4 - $0x4] sm:$0x70] %vm1109_vm6, %v1107_v19 }
0x11c7   :  { %v1212_v21 = vpop.eup %1211 }
0x11c8   :  { %v1108_v22 = vmul.f32 %v1212_v21, %v1208_v42 }
0x11ca   :  { %1111 = vst.msk [vmem:[%s1722_s4] sm:$0x70] %vm1109_vm6, %v1108_v22 }

</bundles_post_ra>
